<compile_context>
chip_gen: v7x
topology: tpu7x:2x2x1
jax: 0.10.0
libtpu: 0.0.40
codegen_flags: <defaults>
</compile_context>

<pallas_src>
import functools

import numpy as np
import jax
import jax.numpy as jnp
from jax import lax
from jax.experimental import pallas as pl
from jax.experimental.pallas import tpu as pltpu


def _sparse_mta_kernel(scores_ref, wrow_ref, brow_ref, out_ref,
                       *, K, C, groups, L):
    """One batch element per grid step.

    Packed layout (input and output): sublane axis = key position k,
    lane axis = c * L + q (channel-major, query-minor).  C == C_in == C_out.
    """
    Cg = C // groups
    pad = K // 2
    NEG = jnp.float32(-1.0e9)
    N = C * L

    z = scores_ref[...].astype(jnp.float32)                  # (L, N)
    k_idx = lax.broadcasted_iota(jnp.int32, (L, N), 0)       # key index (sublane)
    q_idx = lax.broadcasted_iota(jnp.int32, (L, N), 1)       # packed lane index
    if L & (L - 1) == 0:
        q_row = jnp.bitwise_and(q_idx, L - 1)                # query index per lane
    else:
        q_row = q_idx % L
    causal = k_idx <= q_row                                  # reused for re-mask

    # causal mask: keep k <= q, else -1e9 (matches reference masked_fill).
    z = jnp.where(causal, z, NEG)

    # ---- sparsemax along the key (sublane) axis, rank-based (sort-free) ----
    #   c[k, n] = #{j : z[j, n] >= z[k, n]},  s[k, n] = sum of those z[j, n].
    c = jnp.zeros((L, N), jnp.float32)
    s = jnp.zeros((L, N), jnp.float32)
    # NOTE: for L >> 32 switch to lax.fori_loop(0, L, body, (c, s), unroll=8);
    # at L == 16 the fully-unrolled static loop is cheapest.
    for j in range(L):
        zj = z[j:j + 1, :]                                   # (1, N)
        m = zj >= z
        c = c + jnp.where(m, 1.0, 0.0)
        s = s + jnp.where(m, zj, 0.0)

    cond = jnp.logical_and(1.0 + c * z > s, z > jnp.float32(-1.0e8))
    condf = jnp.where(cond, 1.0, 0.0)
    k_sup = jnp.sum(condf, axis=0, keepdims=True)            # (1, N) support size
    s_sup = jnp.sum(condf * z, axis=0, keepdims=True)        # (1, N) support sum
    k_safe = jnp.maximum(k_sup, 1.0)
    tau = (s_sup - 1.0) / k_safe
    # k_sup == 0 never happens under causal masking (diagonal stays unmasked);
    # moderate finite sentinel keeps any downstream arithmetic overflow-free.
    tau = jnp.where(k_sup == 0.0, jnp.float32(1.0e30), tau)
    probs = jnp.maximum(z - tau, 0.0)                        # (L, N)

    # ---- grouped KxK "same" conv via full-width rolls + per-lane weight rows.
    # Tap (kw, kh, delta): key shift dk = kw - pad (sublane), lane shift
    # delta*L + dq with dq = kh - pad and delta = ic - oc within a group.
    # Query-boundary, group-boundary and lane-wrap suppression are all baked
    # into the host-built weight rows (zero weight at invalid lanes).
    deltas = list(range(-(Cg - 1), Cg))
    acc = jnp.zeros((L, N), jnp.float32)
    t = 0
    for kw in range(K):
        dk = kw - pad
        if dk == 0:
            pk = probs
        else:
            pk = pltpu.roll(probs, shift=(-dk) % L, axis=0)
            k_ok = (k_idx < L - dk) if dk > 0 else (k_idx >= -dk)
            pk = jnp.where(k_ok, pk, 0.0)
        for kh in range(K):
            dq = kh - pad
            for delta in deltas:
                shift = delta * L + dq
                src = pk if shift == 0 else pltpu.roll(pk, shift=(-shift) % N, axis=1)
                acc = acc + wrow_ref[t:t + 1, :] * src
                t += 1
    # NOTE: at production channel counts (Cg*K*K, Cg >= ~64-128) move this to
    # an im2col MXU matmul (128-tiles on v5e, 256 on v6e/v7x); the MXU is idle
    # here but would be >90% wasted at this toy contraction size.

    # bias + causal re-mask + single lane-dense store of the packed block.
    out = jnp.where(causal, acc + brow_ref[...], 0.0)
    out_ref[...] = out.astype(out_ref.dtype)


def _build_weight_rows(weight, K, C_in, C_out, groups, L):
    """Per-lane weight rows (n_taps, C_out*L) with edge/group masks folded in."""
    Cg = C_in // groups
    pad = K // 2
    deltas = list(range(-(Cg - 1), Cg))
    w = weight.astype(jnp.float32)

    oc = np.arange(C_out)
    g = oc // Cg
    q = np.arange(L)
    rows = []
    for kw in range(K):
        for kh in range(K):
            dq = kh - pad
            q_ok = ((q + dq >= 0) & (q + dq < L)).astype(np.float32)      # (L,)
            for delta in deltas:
                ic = oc + delta
                ch_ok = ((ic >= 0) & (ic < C_in) & (ic // Cg == g))       # (C_out,)
                ic_rel = np.clip(ic - g * Cg, 0, Cg - 1)
                wv = w[oc, ic_rel, kh, kw] * jnp.asarray(ch_ok, jnp.float32)
                row = wv[:, None] * jnp.asarray(q_ok, jnp.float32)[None, :]
                rows.append(row.reshape(-1))                              # (C_out*L,)
    return jnp.stack(rows, axis=0)                                        # (n_taps, N_out)


def sparse_multi_token_attention(scores, weight, bias, *, K, groups):
    B, C_in, L, _ = scores.shape
    C_out = weight.shape[0]
    if C_in != C_out:
        # TODO(synk): C_in != C_out needs a lane-gather channel expand (no uniform
        # per-tap lane shift exists); only the C_in == C_out path is implemented.
        raise NotImplementedError("sparse_multi_token_attention kernel requires C_in == C_out")
    Cg = C_in // groups
    N_in = C_in * L
    N_out = C_out * L
    n_taps = K * K * (2 * Cg - 1)

    # Lane-dense repack: (B, C, Lq, Lk) -> (B, Lk, C*Lq).
    # NOTE: ideally fuse this pack (and the final unpack) into the producer /
    # consumer ops so activations stay packed; here they are extra HBM passes
    # and are accounted for in the CostEstimate below.
    packed = jnp.transpose(scores, (0, 3, 1, 2)).reshape(B, L, N_in)

    w_rows = _build_weight_rows(weight, K, C_in, C_out, groups, L)          # (n_taps, N_out)
    b_vec = (bias if bias is not None else jnp.zeros((C_out,), jnp.float32))
    b_row = jnp.repeat(b_vec.astype(jnp.float32), L).reshape(1, N_out)      # (1, N_out)

    kernel = functools.partial(_sparse_mta_kernel, K=K, C=C_in, groups=groups, L=L)

    flops = B * (L * N_in * (4 * L + 12)          # rank-based sparsemax
                 + n_taps * L * N_out * 2)        # conv FMAs
    bytes_kernel = 4 * B * L * (N_in + N_out) + 4 * (n_taps * N_out + N_out)
    bytes_wrapper = 4 * B * L * (2 * N_in + 2 * N_out)   # pack + unpack passes
    bytes_accessed = bytes_kernel + bytes_wrapper

    # NOTE: at large L / C the lane axis must be tiled (grid=(B, cdiv(C*L, TN))
    # with TN channel-aligned) and vmem_limit_bytes set to fit v7x's 64 MiB
    # VMEM / v5e's 16 MiB scoped default; the key axis stays full on sublanes.
    # grid=(B,) with B even keeps both v7x TensorCores busy (B=2 here).
    out_packed = pl.pallas_call(
        kernel,
        out_shape=jax.ShapeDtypeStruct((B, L, N_out), scores.dtype),
        grid=(B,),
        in_specs=[
            pl.BlockSpec((None, L, N_in), lambda b: (b, 0, 0)),
            pl.BlockSpec((n_taps, N_out), lambda b: (0, 0)),   # per-lane weight rows
            pl.BlockSpec((1, N_out), lambda b: (0, 0)),        # per-lane bias row
        ],
        out_specs=pl.BlockSpec((None, L, N_out), lambda b: (b, 0, 0)),
        compiler_params=pltpu.CompilerParams(
            dimension_semantics=("parallel",)),
        cost_estimate=pl.CostEstimate(flops=flops, transcendentals=0,
                                      bytes_accessed=bytes_accessed),
    )(packed, w_rows, b_row)

    # Unpack: (B, Lk, C_out*Lq) -> (B, C_out, Lq, Lk).
    return out_packed.reshape(B, L, C_out, L).transpose(0, 2, 3, 1)


def reference(scores, weight, bias, *, K, groups):
    """Pure-JAX mirror of the PyTorch forward (sort/cumsum/gather sparsemax)."""
    B, C_in, L, _ = scores.shape
    mask = jnp.tril(jnp.ones((L, L), dtype=bool))[None, None]
    z = jnp.where(mask, scores.astype(jnp.float32), jnp.float32(-1.0e9))
    z_sorted = -jnp.sort(-z, axis=-1)                         # descending
    cum = jnp.cumsum(z_sorted, axis=-1)
    kidx = jnp.arange(1, L + 1, dtype=jnp.float32).reshape(1, 1, 1, L)
    cond = ((1.0 + kidx * z_sorted) > cum) & (z_sorted > -1.0e8)
    k = jnp.sum(cond, axis=-1, keepdims=True)
    k_safe = jnp.maximum(k, 1)
    cum_k = jnp.take_along_axis(cum, k_safe - 1, axis=-1)
    tau = (cum_k - 1.0) / k_safe.astype(jnp.float32)
    tau = jnp.where(k == 0, jnp.inf, tau)
    probs = jnp.clip(z - tau, 0.0, None)
    out = lax.conv_general_dilated(
        probs, weight.astype(jnp.float32), (1, 1),
        ((K // 2, K // 2), (K // 2, K // 2)),
        dimension_numbers=("NCHW", "OIHW", "NCHW"),
        feature_group_count=groups)
    if bias is not None:
        out = out + bias.astype(jnp.float32).reshape(1, -1, 1, 1)
    out = jnp.where(mask, out, 0.0)
    return out.astype(scores.dtype)


if __name__ == "__main__":
    B, C_in, C_out, K, groups, L = 2, 4, 4, 3, 2, 16

    key = jax.random.PRNGKey(0)
    k1, k2, k3 = jax.random.split(key, 3)
    scores = jax.random.normal(k1, (B, C_in, L, L), dtype=jnp.float32)
    weight = jax.random.normal(k2, (C_out, C_in // groups, K, K),
                               dtype=jnp.float32) * 0.1
    bias = jax.random.normal(k3, (C_out,), dtype=jnp.float32) * 0.05

    out = sparse_multi_token_attention(scores, weight, bias, K=K, groups=groups)
    out = jax.block_until_ready(out)

    ref = jax.block_until_ready(reference(scores, weight, bias, K=K, groups=groups))
    assert out.shape == (B, C_out, L, L)
    np.testing.assert_allclose(np.asarray(out), np.asarray(ref),
                               atol=1e-4, rtol=1e-4)
    print("KERNEL_OK")
</pallas_src>

<mosaic_0001>
module attributes {stable_mosaic.version = 11 : i64} {
  func.func @_sparse_mta_kernel(%arg0: i32, %arg1: memref<1x16x64xf32, #tpu.memory_space<vmem>>, %arg2: memref<27x64xf32, #tpu.memory_space<vmem>>, %arg3: memref<1x64xf32, #tpu.memory_space<vmem>>, %arg4: memref<1x16x64xf32, #tpu.memory_space<vmem>>) attributes {dimension_semantics = [#tpu.dimension_semantics<parallel>], iteration_bounds = array<i64: 2>, scalar_prefetch = 0 : i64, scratch_operands = 0 : i64, tpu.core_type = #tpu.core_type<tc>, window_params = [{transform_indices = @transform_0, window_bounds = array<i64: 1, 16, 64>}, {pipeline_mode = #tpu.pipeline_mode<synchronous>, transform_indices = @transform_1, window_bounds = array<i64: 27, 64>}, {pipeline_mode = #tpu.pipeline_mode<synchronous>, transform_indices = @transform_2, window_bounds = array<i64: 1, 64>}, {transform_indices = @transform_3, window_bounds = array<i64: 1, 16, 64>}]} {
    %c0 = arith.constant 0 : index
    %c0_0 = arith.constant 0 : index
    %c0_1 = arith.constant 0 : index
    %0 = vector.load %arg1[%c0, %c0_0, %c0_1] : memref<1x16x64xf32, #tpu.memory_space<vmem>>, vector<1x16x64xf32>
    %1 = vector.shape_cast %0 : vector<1x16x64xf32> to vector<16x64xf32>
    %2 = tpu.iota {dimensions = array<i32: 0>} : vector<16x64xi32>
    %3 = tpu.iota {dimensions = array<i32: 1>} : vector<16x64xi32>
    %c15_i32 = arith.constant 15 : i32
    %4 = vector.broadcast %c15_i32 : i32 to vector<16x64xi32>
    %5 = arith.andi %3, %4 : vector<16x64xi32>
    %6 = arith.cmpi sle, %2, %5 : vector<16x64xi32>
    %cst = arith.constant -1.000000e+09 : f32
    %7 = vector.broadcast %cst : f32 to vector<16x64xf32>
    %8 = arith.select %6, %1, %7 : vector<16x64xi1>, vector<16x64xf32>
    %cst_2 = arith.constant 0.000000e+00 : f32
    %9 = vector.broadcast %cst_2 : f32 to vector<16x64xf32>
    %cst_3 = arith.constant 0.000000e+00 : f32
    %10 = vector.broadcast %cst_3 : f32 to vector<16x64xf32>
    %11 = vector.extract_strided_slice %8 {offsets = [0, 0], sizes = [1, 64], strides = [1, 1]} : vector<16x64xf32> to vector<1x64xf32>
    %12 = vector.broadcast %11 : vector<1x64xf32> to vector<16x64xf32>
    %13 = arith.cmpf oge, %12, %8 : vector<16x64xf32>
    %cst_4 = arith.constant 1.000000e+00 : f32
    %cst_5 = arith.constant 0.000000e+00 : f32
    %14 = vector.broadcast %cst_4 : f32 to vector<16x64xf32>
    %15 = vector.broadcast %cst_5 : f32 to vector<16x64xf32>
    %16 = arith.select %13, %14, %15 : vector<16x64xi1>, vector<16x64xf32>
    %17 = arith.addf %9, %16 : vector<16x64xf32>
    %cst_6 = arith.constant 0.000000e+00 : f32
    %18 = vector.shape_cast %11 : vector<1x64xf32> to vector<1x64xf32>
    %19 = vector.broadcast %18 : vector<1x64xf32> to vector<16x64xf32>
    %20 = vector.broadcast %cst_6 : f32 to vector<16x64xf32>
    %21 = arith.select %13, %19, %20 : vector<16x64xi1>, vector<16x64xf32>
    %22 = arith.addf %10, %21 : vector<16x64xf32>
    %23 = vector.extract_strided_slice %8 {offsets = [1, 0], sizes = [1, 64], strides = [1, 1]} : vector<16x64xf32> to vector<1x64xf32>
    %24 = vector.broadcast %23 : vector<1x64xf32> to vector<16x64xf32>
    %25 = arith.cmpf oge, %24, %8 : vector<16x64xf32>
    %cst_7 = arith.constant 1.000000e+00 : f32
    %cst_8 = arith.constant 0.000000e+00 : f32
    %26 = vector.broadcast %cst_7 : f32 to vector<16x64xf32>
    %27 = vector.broadcast %cst_8 : f32 to vector<16x64xf32>
    %28 = arith.select %25, %26, %27 : vector<16x64xi1>, vector<16x64xf32>
    %29 = arith.addf %17, %28 : vector<16x64xf32>
    %cst_9 = arith.constant 0.000000e+00 : f32
    %30 = vector.shape_cast %23 : vector<1x64xf32> to vector<1x64xf32>
    %31 = vector.broadcast %30 : vector<1x64xf32> to vector<16x64xf32>
    %32 = vector.broadcast %cst_9 : f32 to vector<16x64xf32>
    %33 = arith.select %25, %31, %32 : vector<16x64xi1>, vector<16x64xf32>
    %34 = arith.addf %22, %33 : vector<16x64xf32>
    %35 = vector.extract_strided_slice %8 {offsets = [2, 0], sizes = [1, 64], strides = [1, 1]} : vector<16x64xf32> to vector<1x64xf32>
    %36 = vector.broadcast %35 : vector<1x64xf32> to vector<16x64xf32>
    %37 = arith.cmpf oge, %36, %8 : vector<16x64xf32>
    %cst_10 = arith.constant 1.000000e+00 : f32
    %cst_11 = arith.constant 0.000000e+00 : f32
    %38 = vector.broadcast %cst_10 : f32 to vector<16x64xf32>
    %39 = vector.broadcast %cst_11 : f32 to vector<16x64xf32>
    %40 = arith.select %37, %38, %39 : vector<16x64xi1>, vector<16x64xf32>
    %41 = arith.addf %29, %40 : vector<16x64xf32>
    %cst_12 = arith.constant 0.000000e+00 : f32
    %42 = vector.shape_cast %35 : vector<1x64xf32> to vector<1x64xf32>
    %43 = vector.broadcast %42 : vector<1x64xf32> to vector<16x64xf32>
    %44 = vector.broadcast %cst_12 : f32 to vector<16x64xf32>
    %45 = arith.select %37, %43, %44 : vector<16x64xi1>, vector<16x64xf32>
    %46 = arith.addf %34, %45 : vector<16x64xf32>
    %47 = vector.extract_strided_slice %8 {offsets = [3, 0], sizes = [1, 64], strides = [1, 1]} : vector<16x64xf32> to vector<1x64xf32>
    %48 = vector.broadcast %47 : vector<1x64xf32> to vector<16x64xf32>
    %49 = arith.cmpf oge, %48, %8 : vector<16x64xf32>
    %cst_13 = arith.constant 1.000000e+00 : f32
    %cst_14 = arith.constant 0.000000e+00 : f32
    %50 = vector.broadcast %cst_13 : f32 to vector<16x64xf32>
    %51 = vector.broadcast %cst_14 : f32 to vector<16x64xf32>
    %52 = arith.select %49, %50, %51 : vector<16x64xi1>, vector<16x64xf32>
    %53 = arith.addf %41, %52 : vector<16x64xf32>
    %cst_15 = arith.constant 0.000000e+00 : f32
    %54 = vector.shape_cast %47 : vector<1x64xf32> to vector<1x64xf32>
    %55 = vector.broadcast %54 : vector<1x64xf32> to vector<16x64xf32>
    %56 = vector.broadcast %cst_15 : f32 to vector<16x64xf32>
    %57 = arith.select %49, %55, %56 : vector<16x64xi1>, vector<16x64xf32>
    %58 = arith.addf %46, %57 : vector<16x64xf32>
    %59 = vector.extract_strided_slice %8 {offsets = [4, 0], sizes = [1, 64], strides = [1, 1]} : vector<16x64xf32> to vector<1x64xf32>
    %60 = vector.broadcast %59 : vector<1x64xf32> to vector<16x64xf32>
    %61 = arith.cmpf oge, %60, %8 : vector<16x64xf32>
    %cst_16 = arith.constant 1.000000e+00 : f32
    %cst_17 = arith.constant 0.000000e+00 : f32
    %62 = vector.broadcast %cst_16 : f32 to vector<16x64xf32>
    %63 = vector.broadcast %cst_17 : f32 to vector<16x64xf32>
    %64 = arith.select %61, %62, %63 : vector<16x64xi1>, vector<16x64xf32>
    %65 = arith.addf %53, %64 : vector<16x64xf32>
    %cst_18 = arith.constant 0.000000e+00 : f32
    %66 = vector.shape_cast %59 : vector<1x64xf32> to vector<1x64xf32>
    %67 = vector.broadcast %66 : vector<1x64xf32> to vector<16x64xf32>
    %68 = vector.broadcast %cst_18 : f32 to vector<16x64xf32>
    %69 = arith.select %61, %67, %68 : vector<16x64xi1>, vector<16x64xf32>
    %70 = arith.addf %58, %69 : vector<16x64xf32>
    %71 = vector.extract_strided_slice %8 {offsets = [5, 0], sizes = [1, 64], strides = [1, 1]} : vector<16x64xf32> to vector<1x64xf32>
    %72 = vector.broadcast %71 : vector<1x64xf32> to vector<16x64xf32>
    %73 = arith.cmpf oge, %72, %8 : vector<16x64xf32>
    %cst_19 = arith.constant 1.000000e+00 : f32
    %cst_20 = arith.constant 0.000000e+00 : f32
    %74 = vector.broadcast %cst_19 : f32 to vector<16x64xf32>
    %75 = vector.broadcast %cst_20 : f32 to vector<16x64xf32>
    %76 = arith.select %73, %74, %75 : vector<16x64xi1>, vector<16x64xf32>
    %77 = arith.addf %65, %76 : vector<16x64xf32>
    %cst_21 = arith.constant 0.000000e+00 : f32
    %78 = vector.shape_cast %71 : vector<1x64xf32> to vector<1x64xf32>
    %79 = vector.broadcast %78 : vector<1x64xf32> to vector<16x64xf32>
    %80 = vector.broadcast %cst_21 : f32 to vector<16x64xf32>
    %81 = arith.select %73, %79, %80 : vector<16x64xi1>, vector<16x64xf32>
    %82 = arith.addf %70, %81 : vector<16x64xf32>
    %83 = vector.extract_strided_slice %8 {offsets = [6, 0], sizes = [1, 64], strides = [1, 1]} : vector<16x64xf32> to vector<1x64xf32>
    %84 = vector.broadcast %83 : vector<1x64xf32> to vector<16x64xf32>
    %85 = arith.cmpf oge, %84, %8 : vector<16x64xf32>
    %cst_22 = arith.constant 1.000000e+00 : f32
    %cst_23 = arith.constant 0.000000e+00 : f32
    %86 = vector.broadcast %cst_22 : f32 to vector<16x64xf32>
    %87 = vector.broadcast %cst_23 : f32 to vector<16x64xf32>
    %88 = arith.select %85, %86, %87 : vector<16x64xi1>, vector<16x64xf32>
    %89 = arith.addf %77, %88 : vector<16x64xf32>
    %cst_24 = arith.constant 0.000000e+00 : f32
    %90 = vector.shape_cast %83 : vector<1x64xf32> to vector<1x64xf32>
    %91 = vector.broadcast %90 : vector<1x64xf32> to vector<16x64xf32>
    %92 = vector.broadcast %cst_24 : f32 to vector<16x64xf32>
    %93 = arith.select %85, %91, %92 : vector<16x64xi1>, vector<16x64xf32>
    %94 = arith.addf %82, %93 : vector<16x64xf32>
    %95 = vector.extract_strided_slice %8 {offsets = [7, 0], sizes = [1, 64], strides = [1, 1]} : vector<16x64xf32> to vector<1x64xf32>
    %96 = vector.broadcast %95 : vector<1x64xf32> to vector<16x64xf32>
    %97 = arith.cmpf oge, %96, %8 : vector<16x64xf32>
    %cst_25 = arith.constant 1.000000e+00 : f32
    %cst_26 = arith.constant 0.000000e+00 : f32
    %98 = vector.broadcast %cst_25 : f32 to vector<16x64xf32>
    %99 = vector.broadcast %cst_26 : f32 to vector<16x64xf32>
    %100 = arith.select %97, %98, %99 : vector<16x64xi1>, vector<16x64xf32>
    %101 = arith.addf %89, %100 : vector<16x64xf32>
    %cst_27 = arith.constant 0.000000e+00 : f32
    %102 = vector.shape_cast %95 : vector<1x64xf32> to vector<1x64xf32>
    %103 = vector.broadcast %102 : vector<1x64xf32> to vector<16x64xf32>
    %104 = vector.broadcast %cst_27 : f32 to vector<16x64xf32>
    %105 = arith.select %97, %103, %104 : vector<16x64xi1>, vector<16x64xf32>
    %106 = arith.addf %94, %105 : vector<16x64xf32>
    %107 = vector.extract_strided_slice %8 {offsets = [8, 0], sizes = [1, 64], strides = [1, 1]} : vector<16x64xf32> to vector<1x64xf32>
    %108 = vector.broadcast %107 : vector<1x64xf32> to vector<16x64xf32>
    %109 = arith.cmpf oge, %108, %8 : vector<16x64xf32>
    %cst_28 = arith.constant 1.000000e+00 : f32
    %cst_29 = arith.constant 0.000000e+00 : f32
    %110 = vector.broadcast %cst_28 : f32 to vector<16x64xf32>
    %111 = vector.broadcast %cst_29 : f32 to vector<16x64xf32>
    %112 = arith.select %109, %110, %111 : vector<16x64xi1>, vector<16x64xf32>
    %113 = arith.addf %101, %112 : vector<16x64xf32>
    %cst_30 = arith.constant 0.000000e+00 : f32
    %114 = vector.shape_cast %107 : vector<1x64xf32> to vector<1x64xf32>
    %115 = vector.broadcast %114 : vector<1x64xf32> to vector<16x64xf32>
    %116 = vector.broadcast %cst_30 : f32 to vector<16x64xf32>
    %117 = arith.select %109, %115, %116 : vector<16x64xi1>, vector<16x64xf32>
    %118 = arith.addf %106, %117 : vector<16x64xf32>
    %119 = vector.extract_strided_slice %8 {offsets = [9, 0], sizes = [1, 64], strides = [1, 1]} : vector<16x64xf32> to vector<1x64xf32>
    %120 = vector.broadcast %119 : vector<1x64xf32> to vector<16x64xf32>
    %121 = arith.cmpf oge, %120, %8 : vector<16x64xf32>
    %cst_31 = arith.constant 1.000000e+00 : f32
    %cst_32 = arith.constant 0.000000e+00 : f32
    %122 = vector.broadcast %cst_31 : f32 to vector<16x64xf32>
    %123 = vector.broadcast %cst_32 : f32 to vector<16x64xf32>
    %124 = arith.select %121, %122, %123 : vector<16x64xi1>, vector<16x64xf32>
    %125 = arith.addf %113, %124 : vector<16x64xf32>
    %cst_33 = arith.constant 0.000000e+00 : f32
    %126 = vector.shape_cast %119 : vector<1x64xf32> to vector<1x64xf32>
    %127 = vector.broadcast %126 : vector<1x64xf32> to vector<16x64xf32>
    %128 = vector.broadcast %cst_33 : f32 to vector<16x64xf32>
    %129 = arith.select %121, %127, %128 : vector<16x64xi1>, vector<16x64xf32>
    %130 = arith.addf %118, %129 : vector<16x64xf32>
    %131 = vector.extract_strided_slice %8 {offsets = [10, 0], sizes = [1, 64], strides = [1, 1]} : vector<16x64xf32> to vector<1x64xf32>
    %132 = vector.broadcast %131 : vector<1x64xf32> to vector<16x64xf32>
    %133 = arith.cmpf oge, %132, %8 : vector<16x64xf32>
    %cst_34 = arith.constant 1.000000e+00 : f32
    %cst_35 = arith.constant 0.000000e+00 : f32
    %134 = vector.broadcast %cst_34 : f32 to vector<16x64xf32>
    %135 = vector.broadcast %cst_35 : f32 to vector<16x64xf32>
    %136 = arith.select %133, %134, %135 : vector<16x64xi1>, vector<16x64xf32>
    %137 = arith.addf %125, %136 : vector<16x64xf32>
    %cst_36 = arith.constant 0.000000e+00 : f32
    %138 = vector.shape_cast %131 : vector<1x64xf32> to vector<1x64xf32>
    %139 = vector.broadcast %138 : vector<1x64xf32> to vector<16x64xf32>
    %140 = vector.broadcast %cst_36 : f32 to vector<16x64xf32>
    %141 = arith.select %133, %139, %140 : vector<16x64xi1>, vector<16x64xf32>
    %142 = arith.addf %130, %141 : vector<16x64xf32>
    %143 = vector.extract_strided_slice %8 {offsets = [11, 0], sizes = [1, 64], strides = [1, 1]} : vector<16x64xf32> to vector<1x64xf32>
    %144 = vector.broadcast %143 : vector<1x64xf32> to vector<16x64xf32>
    %145 = arith.cmpf oge, %144, %8 : vector<16x64xf32>
    %cst_37 = arith.constant 1.000000e+00 : f32
    %cst_38 = arith.constant 0.000000e+00 : f32
    %146 = vector.broadcast %cst_37 : f32 to vector<16x64xf32>
    %147 = vector.broadcast %cst_38 : f32 to vector<16x64xf32>
    %148 = arith.select %145, %146, %147 : vector<16x64xi1>, vector<16x64xf32>
    %149 = arith.addf %137, %148 : vector<16x64xf32>
    %cst_39 = arith.constant 0.000000e+00 : f32
    %150 = vector.shape_cast %143 : vector<1x64xf32> to vector<1x64xf32>
    %151 = vector.broadcast %150 : vector<1x64xf32> to vector<16x64xf32>
    %152 = vector.broadcast %cst_39 : f32 to vector<16x64xf32>
    %153 = arith.select %145, %151, %152 : vector<16x64xi1>, vector<16x64xf32>
    %154 = arith.addf %142, %153 : vector<16x64xf32>
    %155 = vector.extract_strided_slice %8 {offsets = [12, 0], sizes = [1, 64], strides = [1, 1]} : vector<16x64xf32> to vector<1x64xf32>
    %156 = vector.broadcast %155 : vector<1x64xf32> to vector<16x64xf32>
    %157 = arith.cmpf oge, %156, %8 : vector<16x64xf32>
    %cst_40 = arith.constant 1.000000e+00 : f32
    %cst_41 = arith.constant 0.000000e+00 : f32
    %158 = vector.broadcast %cst_40 : f32 to vector<16x64xf32>
    %159 = vector.broadcast %cst_41 : f32 to vector<16x64xf32>
    %160 = arith.select %157, %158, %159 : vector<16x64xi1>, vector<16x64xf32>
    %161 = arith.addf %149, %160 : vector<16x64xf32>
    %cst_42 = arith.constant 0.000000e+00 : f32
    %162 = vector.shape_cast %155 : vector<1x64xf32> to vector<1x64xf32>
    %163 = vector.broadcast %162 : vector<1x64xf32> to vector<16x64xf32>
    %164 = vector.broadcast %cst_42 : f32 to vector<16x64xf32>
    %165 = arith.select %157, %163, %164 : vector<16x64xi1>, vector<16x64xf32>
    %166 = arith.addf %154, %165 : vector<16x64xf32>
    %167 = vector.extract_strided_slice %8 {offsets = [13, 0], sizes = [1, 64], strides = [1, 1]} : vector<16x64xf32> to vector<1x64xf32>
    %168 = vector.broadcast %167 : vector<1x64xf32> to vector<16x64xf32>
    %169 = arith.cmpf oge, %168, %8 : vector<16x64xf32>
    %cst_43 = arith.constant 1.000000e+00 : f32
    %cst_44 = arith.constant 0.000000e+00 : f32
    %170 = vector.broadcast %cst_43 : f32 to vector<16x64xf32>
    %171 = vector.broadcast %cst_44 : f32 to vector<16x64xf32>
    %172 = arith.select %169, %170, %171 : vector<16x64xi1>, vector<16x64xf32>
    %173 = arith.addf %161, %172 : vector<16x64xf32>
    %cst_45 = arith.constant 0.000000e+00 : f32
    %174 = vector.shape_cast %167 : vector<1x64xf32> to vector<1x64xf32>
    %175 = vector.broadcast %174 : vector<1x64xf32> to vector<16x64xf32>
    %176 = vector.broadcast %cst_45 : f32 to vector<16x64xf32>
    %177 = arith.select %169, %175, %176 : vector<16x64xi1>, vector<16x64xf32>
    %178 = arith.addf %166, %177 : vector<16x64xf32>
    %179 = vector.extract_strided_slice %8 {offsets = [14, 0], sizes = [1, 64], strides = [1, 1]} : vector<16x64xf32> to vector<1x64xf32>
    %180 = vector.broadcast %179 : vector<1x64xf32> to vector<16x64xf32>
    %181 = arith.cmpf oge, %180, %8 : vector<16x64xf32>
    %cst_46 = arith.constant 1.000000e+00 : f32
    %cst_47 = arith.constant 0.000000e+00 : f32
    %182 = vector.broadcast %cst_46 : f32 to vector<16x64xf32>
    %183 = vector.broadcast %cst_47 : f32 to vector<16x64xf32>
    %184 = arith.select %181, %182, %183 : vector<16x64xi1>, vector<16x64xf32>
    %185 = arith.addf %173, %184 : vector<16x64xf32>
    %cst_48 = arith.constant 0.000000e+00 : f32
    %186 = vector.shape_cast %179 : vector<1x64xf32> to vector<1x64xf32>
    %187 = vector.broadcast %186 : vector<1x64xf32> to vector<16x64xf32>
    %188 = vector.broadcast %cst_48 : f32 to vector<16x64xf32>
    %189 = arith.select %181, %187, %188 : vector<16x64xi1>, vector<16x64xf32>
    %190 = arith.addf %178, %189 : vector<16x64xf32>
    %191 = vector.extract_strided_slice %8 {offsets = [15, 0], sizes = [1, 64], strides = [1, 1]} : vector<16x64xf32> to vector<1x64xf32>
    %192 = vector.broadcast %191 : vector<1x64xf32> to vector<16x64xf32>
    %193 = arith.cmpf oge, %192, %8 : vector<16x64xf32>
    %cst_49 = arith.constant 1.000000e+00 : f32
    %cst_50 = arith.constant 0.000000e+00 : f32
    %194 = vector.broadcast %cst_49 : f32 to vector<16x64xf32>
    %195 = vector.broadcast %cst_50 : f32 to vector<16x64xf32>
    %196 = arith.select %193, %194, %195 : vector<16x64xi1>, vector<16x64xf32>
    %197 = arith.addf %185, %196 : vector<16x64xf32>
    %cst_51 = arith.constant 0.000000e+00 : f32
    %198 = vector.shape_cast %191 : vector<1x64xf32> to vector<1x64xf32>
    %199 = vector.broadcast %198 : vector<1x64xf32> to vector<16x64xf32>
    %200 = vector.broadcast %cst_51 : f32 to vector<16x64xf32>
    %201 = arith.select %193, %199, %200 : vector<16x64xi1>, vector<16x64xf32>
    %202 = arith.addf %190, %201 : vector<16x64xf32>
    %203 = arith.mulf %197, %8 : vector<16x64xf32>
    %cst_52 = arith.constant 1.000000e+00 : f32
    %204 = vector.broadcast %cst_52 : f32 to vector<16x64xf32>
    %205 = arith.addf %204, %203 : vector<16x64xf32>
    %206 = arith.cmpf ogt, %205, %202 : vector<16x64xf32>
    %cst_53 = arith.constant -1.000000e+08 : f32
    %207 = vector.broadcast %cst_53 : f32 to vector<16x64xf32>
    %208 = arith.cmpf ogt, %8, %207 : vector<16x64xf32>
    %209 = arith.andi %206, %208 : vector<16x64xi1>
    %cst_54 = arith.constant 1.000000e+00 : f32
    %cst_55 = arith.constant 0.000000e+00 : f32
    %210 = vector.broadcast %cst_54 : f32 to vector<16x64xf32>
    %211 = vector.broadcast %cst_55 : f32 to vector<16x64xf32>
    %212 = arith.select %209, %210, %211 : vector<16x64xi1>, vector<16x64xf32>
    %cst_56 = arith.constant dense<0.000000e+00> : vector<64xf32>
    %213 = vector.multi_reduction <add>, %212, %cst_56 [0] : vector<16x64xf32> to vector<64xf32>
    %214 = vector.shape_cast %213 : vector<64xf32> to vector<1x64xf32>
    %215 = arith.mulf %212, %8 : vector<16x64xf32>
    %cst_57 = arith.constant dense<0.000000e+00> : vector<64xf32>
    %216 = vector.multi_reduction <add>, %215, %cst_57 [0] : vector<16x64xf32> to vector<64xf32>
    %217 = vector.shape_cast %216 : vector<64xf32> to vector<1x64xf32>
    %cst_58 = arith.constant 1.000000e+00 : f32
    %218 = vector.broadcast %cst_58 : f32 to vector<1x64xf32>
    %219 = arith.maximumf %214, %218 : vector<1x64xf32>
    %cst_59 = arith.constant 1.000000e+00 : f32
    %220 = vector.broadcast %cst_59 : f32 to vector<1x64xf32>
    %221 = arith.subf %217, %220 : vector<1x64xf32>
    %222 = arith.divf %221, %219 : vector<1x64xf32>
    %cst_60 = arith.constant 0.000000e+00 : f32
    %223 = vector.broadcast %cst_60 : f32 to vector<1x64xf32>
    %224 = arith.cmpf oeq, %214, %223 : vector<1x64xf32>
    %cst_61 = arith.constant 1.000000e+30 : f32
    %225 = vector.broadcast %cst_61 : f32 to vector<1x64xf32>
    %226 = arith.select %224, %225, %222 : vector<1x64xi1>, vector<1x64xf32>
    %227 = vector.broadcast %226 : vector<1x64xf32> to vector<16x64xf32>
    %228 = arith.subf %8, %227 : vector<16x64xf32>
    %cst_62 = arith.constant 0.000000e+00 : f32
    %229 = vector.broadcast %cst_62 : f32 to vector<16x64xf32>
    %230 = arith.maximumf %228, %229 : vector<16x64xf32>
    %cst_63 = arith.constant 0.000000e+00 : f32
    %231 = vector.broadcast %cst_63 : f32 to vector<16x64xf32>
    %c1_i32 = arith.constant 1 : i32
    %232 = tpu.dynamic_rotate %230 by %c1_i32 dim 0 : vector<16x64xf32>, i32 -> vector<16x64xf32>
    %c1_i32_64 = arith.constant 1 : i32
    %233 = vector.broadcast %c1_i32_64 : i32 to vector<16x64xi32>
    %234 = arith.cmpi sge, %2, %233 : vector<16x64xi32>
    %cst_65 = arith.constant 0.000000e+00 : f32
    %235 = vector.broadcast %cst_65 : f32 to vector<16x64xf32>
    %236 = arith.select %234, %232, %235 : vector<16x64xi1>, vector<16x64xf32>
    %c17_i32 = arith.constant 17 : i32
    %237 = tpu.dynamic_rotate %236 by %c17_i32 dim 1 : vector<16x64xf32>, i32 -> vector<16x64xf32>
    %c0_66 = arith.constant 0 : index
    %c0_67 = arith.constant 0 : index
    %238 = vector.load %arg2[%c0_66, %c0_67] : memref<27x64xf32, #tpu.memory_space<vmem>>, vector<1x64xf32>
    %239 = vector.broadcast %238 : vector<1x64xf32> to vector<16x64xf32>
    %240 = arith.mulf %239, %237 : vector<16x64xf32>
    %241 = arith.addf %231, %240 : vector<16x64xf32>
    %c1_i32_68 = arith.constant 1 : i32
    %242 = tpu.dynamic_rotate %236 by %c1_i32_68 dim 1 : vector<16x64xf32>, i32 -> vector<16x64xf32>
    %c1 = arith.constant 1 : index
    %c0_69 = arith.constant 0 : index
    %243 = vector.load %arg2[%c1, %c0_69] : memref<27x64xf32, #tpu.memory_space<vmem>>, vector<1x64xf32>
    %244 = vector.broadcast %243 : vector<1x64xf32> to vector<16x64xf32>
    %245 = arith.mulf %244, %242 : vector<16x64xf32>
    %246 = arith.addf %241, %245 : vector<16x64xf32>
    %c49_i32 = arith.constant 49 : i32
    %247 = tpu.dynamic_rotate %236 by %c49_i32 dim 1 : vector<16x64xf32>, i32 -> vector<16x64xf32>
    %c2 = arith.constant 2 : index
    %c0_70 = arith.constant 0 : index
    %248 = vector.load %arg2[%c2, %c0_70] : memref<27x64xf32, #tpu.memory_space<vmem>>, vector<1x64xf32>
    %249 = vector.broadcast %248 : vector<1x64xf32> to vector<16x64xf32>
    %250 = arith.mulf %249, %247 : vector<16x64xf32>
    %251 = arith.addf %246, %250 : vector<16x64xf32>
    %c16_i32 = arith.constant 16 : i32
    %252 = tpu.dynamic_rotate %236 by %c16_i32 dim 1 : vector<16x64xf32>, i32 -> vector<16x64xf32>
    %c3 = arith.constant 3 : index
    %c0_71 = arith.constant 0 : index
    %253 = vector.load %arg2[%c3, %c0_71] : memref<27x64xf32, #tpu.memory_space<vmem>>, vector<1x64xf32>
    %254 = vector.broadcast %253 : vector<1x64xf32> to vector<16x64xf32>
    %255 = arith.mulf %254, %252 : vector<16x64xf32>
    %256 = arith.addf %251, %255 : vector<16x64xf32>
    %c4 = arith.constant 4 : index
    %c0_72 = arith.constant 0 : index
    %257 = vector.load %arg2[%c4, %c0_72] : memref<27x64xf32, #tpu.memory_space<vmem>>, vector<1x64xf32>
    %258 = vector.broadcast %257 : vector<1x64xf32> to vector<16x64xf32>
    %259 = arith.mulf %258, %236 : vector<16x64xf32>
    %260 = arith.addf %256, %259 : vector<16x64xf32>
    %c48_i32 = arith.constant 48 : i32
    %261 = tpu.dynamic_rotate %236 by %c48_i32 dim 1 : vector<16x64xf32>, i32 -> vector<16x64xf32>
    %c5 = arith.constant 5 : index
    %c0_73 = arith.constant 0 : index
    %262 = vector.load %arg2[%c5, %c0_73] : memref<27x64xf32, #tpu.memory_space<vmem>>, vector<1x64xf32>
    %263 = vector.broadcast %262 : vector<1x64xf32> to vector<16x64xf32>
    %264 = arith.mulf %263, %261 : vector<16x64xf32>
    %265 = arith.addf %260, %264 : vector<16x64xf32>
    %c15_i32_74 = arith.constant 15 : i32
    %266 = tpu.dynamic_rotate %236 by %c15_i32_74 dim 1 : vector<16x64xf32>, i32 -> vector<16x64xf32>
    %c6 = arith.constant 6 : index
    %c0_75 = arith.constant 0 : index
    %267 = vector.load %arg2[%c6, %c0_75] : memref<27x64xf32, #tpu.memory_space<vmem>>, vector<1x64xf32>
    %268 = vector.broadcast %267 : vector<1x64xf32> to vector<16x64xf32>
    %269 = arith.mulf %268, %266 : vector<16x64xf32>
    %270 = arith.addf %265, %269 : vector<16x64xf32>
    %c63_i32 = arith.constant 63 : i32
    %271 = tpu.dynamic_rotate %236 by %c63_i32 dim 1 : vector<16x64xf32>, i32 -> vector<16x64xf32>
    %c7 = arith.constant 7 : index
    %c0_76 = arith.constant 0 : index
    %272 = vector.load %arg2[%c7, %c0_76] : memref<27x64xf32, #tpu.memory_space<vmem>>, vector<1x64xf32>
    %273 = vector.broadcast %272 : vector<1x64xf32> to vector<16x64xf32>
    %274 = arith.mulf %273, %271 : vector<16x64xf32>
    %275 = arith.addf %270, %274 : vector<16x64xf32>
    %c47_i32 = arith.constant 47 : i32
    %276 = tpu.dynamic_rotate %236 by %c47_i32 dim 1 : vector<16x64xf32>, i32 -> vector<16x64xf32>
    %c8 = arith.constant 8 : index
    %c0_77 = arith.constant 0 : index
    %277 = vector.load %arg2[%c8, %c0_77] : memref<27x64xf32, #tpu.memory_space<vmem>>, vector<1x64xf32>
    %278 = vector.broadcast %277 : vector<1x64xf32> to vector<16x64xf32>
    %279 = arith.mulf %278, %276 : vector<16x64xf32>
    %280 = arith.addf %275, %279 : vector<16x64xf32>
    %c17_i32_78 = arith.constant 17 : i32
    %281 = tpu.dynamic_rotate %230 by %c17_i32_78 dim 1 : vector<16x64xf32>, i32 -> vector<16x64xf32>
    %c9 = arith.constant 9 : index
    %c0_79 = arith.constant 0 : index
    %282 = vector.load %arg2[%c9, %c0_79] : memref<27x64xf32, #tpu.memory_space<vmem>>, vector<1x64xf32>
    %283 = vector.broadcast %282 : vector<1x64xf32> to vector<16x64xf32>
    %284 = arith.mulf %283, %281 : vector<16x64xf32>
    %285 = arith.addf %280, %284 : vector<16x64xf32>
    %c1_i32_80 = arith.constant 1 : i32
    %286 = tpu.dynamic_rotate %230 by %c1_i32_80 dim 1 : vector<16x64xf32>, i32 -> vector<16x64xf32>
    %c10 = arith.constant 10 : index
    %c0_81 = arith.constant 0 : index
    %287 = vector.load %arg2[%c10, %c0_81] : memref<27x64xf32, #tpu.memory_space<vmem>>, vector<1x64xf32>
    %288 = vector.broadcast %287 : vector<1x64xf32> to vector<16x64xf32>
    %289 = arith.mulf %288, %286 : vector<16x64xf32>
    %290 = arith.addf %285, %289 : vector<16x64xf32>
    %c49_i32_82 = arith.constant 49 : i32
    %291 = tpu.dynamic_rotate %230 by %c49_i32_82 dim 1 : vector<16x64xf32>, i32 -> vector<16x64xf32>
    %c11 = arith.constant 11 : index
    %c0_83 = arith.constant 0 : index
    %292 = vector.load %arg2[%c11, %c0_83] : memref<27x64xf32, #tpu.memory_space<vmem>>, vector<1x64xf32>
    %293 = vector.broadcast %292 : vector<1x64xf32> to vector<16x64xf32>
    %294 = arith.mulf %293, %291 : vector<16x64xf32>
    %295 = arith.addf %290, %294 : vector<16x64xf32>
    %c16_i32_84 = arith.constant 16 : i32
    %296 = tpu.dynamic_rotate %230 by %c16_i32_84 dim 1 : vector<16x64xf32>, i32 -> vector<16x64xf32>
    %c12 = arith.constant 12 : index
    %c0_85 = arith.constant 0 : index
    %297 = vector.load %arg2[%c12, %c0_85] : memref<27x64xf32, #tpu.memory_space<vmem>>, vector<1x64xf32>
    %298 = vector.broadcast %297 : vector<1x64xf32> to vector<16x64xf32>
    %299 = arith.mulf %298, %296 : vector<16x64xf32>
    %300 = arith.addf %295, %299 : vector<16x64xf32>
    %c13 = arith.constant 13 : index
    %c0_86 = arith.constant 0 : index
    %301 = vector.load %arg2[%c13, %c0_86] : memref<27x64xf32, #tpu.memory_space<vmem>>, vector<1x64xf32>
    %302 = vector.broadcast %301 : vector<1x64xf32> to vector<16x64xf32>
    %303 = arith.mulf %302, %230 : vector<16x64xf32>
    %304 = arith.addf %300, %303 : vector<16x64xf32>
    %c48_i32_87 = arith.constant 48 : i32
    %305 = tpu.dynamic_rotate %230 by %c48_i32_87 dim 1 : vector<16x64xf32>, i32 -> vector<16x64xf32>
    %c14 = arith.constant 14 : index
    %c0_88 = arith.constant 0 : index
    %306 = vector.load %arg2[%c14, %c0_88] : memref<27x64xf32, #tpu.memory_space<vmem>>, vector<1x64xf32>
    %307 = vector.broadcast %306 : vector<1x64xf32> to vector<16x64xf32>
    %308 = arith.mulf %307, %305 : vector<16x64xf32>
    %309 = arith.addf %304, %308 : vector<16x64xf32>
    %c15_i32_89 = arith.constant 15 : i32
    %310 = tpu.dynamic_rotate %230 by %c15_i32_89 dim 1 : vector<16x64xf32>, i32 -> vector<16x64xf32>
    %c15 = arith.constant 15 : index
    %c0_90 = arith.constant 0 : index
    %311 = vector.load %arg2[%c15, %c0_90] : memref<27x64xf32, #tpu.memory_space<vmem>>, vector<1x64xf32>
    %312 = vector.broadcast %311 : vector<1x64xf32> to vector<16x64xf32>
    %313 = arith.mulf %312, %310 : vector<16x64xf32>
    %314 = arith.addf %309, %313 : vector<16x64xf32>
    %c63_i32_91 = arith.constant 63 : i32
    %315 = tpu.dynamic_rotate %230 by %c63_i32_91 dim 1 : vector<16x64xf32>, i32 -> vector<16x64xf32>
    %c16 = arith.constant 16 : index
    %c0_92 = arith.constant 0 : index
    %316 = vector.load %arg2[%c16, %c0_92] : memref<27x64xf32, #tpu.memory_space<vmem>>, vector<1x64xf32>
    %317 = vector.broadcast %316 : vector<1x64xf32> to vector<16x64xf32>
    %318 = arith.mulf %317, %315 : vector<16x64xf32>
    %319 = arith.addf %314, %318 : vector<16x64xf32>
    %c47_i32_93 = arith.constant 47 : i32
    %320 = tpu.dynamic_rotate %230 by %c47_i32_93 dim 1 : vector<16x64xf32>, i32 -> vector<16x64xf32>
    %c17 = arith.constant 17 : index
    %c0_94 = arith.constant 0 : index
    %321 = vector.load %arg2[%c17, %c0_94] : memref<27x64xf32, #tpu.memory_space<vmem>>, vector<1x64xf32>
    %322 = vector.broadcast %321 : vector<1x64xf32> to vector<16x64xf32>
    %323 = arith.mulf %322, %320 : vector<16x64xf32>
    %324 = arith.addf %319, %323 : vector<16x64xf32>
    %c15_i32_95 = arith.constant 15 : i32
    %325 = tpu.dynamic_rotate %230 by %c15_i32_95 dim 0 : vector<16x64xf32>, i32 -> vector<16x64xf32>
    %c15_i32_96 = arith.constant 15 : i32
    %326 = vector.broadcast %c15_i32_96 : i32 to vector<16x64xi32>
    %327 = arith.cmpi slt, %2, %326 : vector<16x64xi32>
    %cst_97 = arith.constant 0.000000e+00 : f32
    %328 = vector.broadcast %cst_97 : f32 to vector<16x64xf32>
    %329 = arith.select %327, %325, %328 : vector<16x64xi1>, vector<16x64xf32>
    %c17_i32_98 = arith.constant 17 : i32
    %330 = tpu.dynamic_rotate %329 by %c17_i32_98 dim 1 : vector<16x64xf32>, i32 -> vector<16x64xf32>
    %c18 = arith.constant 18 : index
    %c0_99 = arith.constant 0 : index
    %331 = vector.load %arg2[%c18, %c0_99] : memref<27x64xf32, #tpu.memory_space<vmem>>, vector<1x64xf32>
    %332 = vector.broadcast %331 : vector<1x64xf32> to vector<16x64xf32>
    %333 = arith.mulf %332, %330 : vector<16x64xf32>
    %334 = arith.addf %324, %333 : vector<16x64xf32>
    %c1_i32_100 = arith.constant 1 : i32
    %335 = tpu.dynamic_rotate %329 by %c1_i32_100 dim 1 : vector<16x64xf32>, i32 -> vector<16x64xf32>
    %c19 = arith.constant 19 : index
    %c0_101 = arith.constant 0 : index
    %336 = vector.load %arg2[%c19, %c0_101] : memref<27x64xf32, #tpu.memory_space<vmem>>, vector<1x64xf32>
    %337 = vector.broadcast %336 : vector<1x64xf32> to vector<16x64xf32>
    %338 = arith.mulf %337, %335 : vector<16x64xf32>
    %339 = arith.addf %334, %338 : vector<16x64xf32>
    %c49_i32_102 = arith.constant 49 : i32
    %340 = tpu.dynamic_rotate %329 by %c49_i32_102 dim 1 : vector<16x64xf32>, i32 -> vector<16x64xf32>
    %c20 = arith.constant 20 : index
    %c0_103 = arith.constant 0 : index
    %341 = vector.load %arg2[%c20, %c0_103] : memref<27x64xf32, #tpu.memory_space<vmem>>, vector<1x64xf32>
    %342 = vector.broadcast %341 : vector<1x64xf32> to vector<16x64xf32>
    %343 = arith.mulf %342, %340 : vector<16x64xf32>
    %344 = arith.addf %339, %343 : vector<16x64xf32>
    %c16_i32_104 = arith.constant 16 : i32
    %345 = tpu.dynamic_rotate %329 by %c16_i32_104 dim 1 : vector<16x64xf32>, i32 -> vector<16x64xf32>
    %c21 = arith.constant 21 : index
    %c0_105 = arith.constant 0 : index
    %346 = vector.load %arg2[%c21, %c0_105] : memref<27x64xf32, #tpu.memory_space<vmem>>, vector<1x64xf32>
    %347 = vector.broadcast %346 : vector<1x64xf32> to vector<16x64xf32>
    %348 = arith.mulf %347, %345 : vector<16x64xf32>
    %349 = arith.addf %344, %348 : vector<16x64xf32>
    %c22 = arith.constant 22 : index
    %c0_106 = arith.constant 0 : index
    %350 = vector.load %arg2[%c22, %c0_106] : memref<27x64xf32, #tpu.memory_space<vmem>>, vector<1x64xf32>
    %351 = vector.broadcast %350 : vector<1x64xf32> to vector<16x64xf32>
    %352 = arith.mulf %351, %329 : vector<16x64xf32>
    %353 = arith.addf %349, %352 : vector<16x64xf32>
    %c48_i32_107 = arith.constant 48 : i32
    %354 = tpu.dynamic_rotate %329 by %c48_i32_107 dim 1 : vector<16x64xf32>, i32 -> vector<16x64xf32>
    %c23 = arith.constant 23 : index
    %c0_108 = arith.constant 0 : index
    %355 = vector.load %arg2[%c23, %c0_108] : memref<27x64xf32, #tpu.memory_space<vmem>>, vector<1x64xf32>
    %356 = vector.broadcast %355 : vector<1x64xf32> to vector<16x64xf32>
    %357 = arith.mulf %356, %354 : vector<16x64xf32>
    %358 = arith.addf %353, %357 : vector<16x64xf32>
    %c15_i32_109 = arith.constant 15 : i32
    %359 = tpu.dynamic_rotate %329 by %c15_i32_109 dim 1 : vector<16x64xf32>, i32 -> vector<16x64xf32>
    %c24 = arith.constant 24 : index
    %c0_110 = arith.constant 0 : index
    %360 = vector.load %arg2[%c24, %c0_110] : memref<27x64xf32, #tpu.memory_space<vmem>>, vector<1x64xf32>
    %361 = vector.broadcast %360 : vector<1x64xf32> to vector<16x64xf32>
    %362 = arith.mulf %361, %359 : vector<16x64xf32>
    %363 = arith.addf %358, %362 : vector<16x64xf32>
    %c63_i32_111 = arith.constant 63 : i32
    %364 = tpu.dynamic_rotate %329 by %c63_i32_111 dim 1 : vector<16x64xf32>, i32 -> vector<16x64xf32>
    %c25 = arith.constant 25 : index
    %c0_112 = arith.constant 0 : index
    %365 = vector.load %arg2[%c25, %c0_112] : memref<27x64xf32, #tpu.memory_space<vmem>>, vector<1x64xf32>
    %366 = vector.broadcast %365 : vector<1x64xf32> to vector<16x64xf32>
    %367 = arith.mulf %366, %364 : vector<16x64xf32>
    %368 = arith.addf %363, %367 : vector<16x64xf32>
    %c47_i32_113 = arith.constant 47 : i32
    %369 = tpu.dynamic_rotate %329 by %c47_i32_113 dim 1 : vector<16x64xf32>, i32 -> vector<16x64xf32>
    %c26 = arith.constant 26 : index
    %c0_114 = arith.constant 0 : index
    %370 = vector.load %arg2[%c26, %c0_114] : memref<27x64xf32, #tpu.memory_space<vmem>>, vector<1x64xf32>
    %371 = vector.broadcast %370 : vector<1x64xf32> to vector<16x64xf32>
    %372 = arith.mulf %371, %369 : vector<16x64xf32>
    %373 = arith.addf %368, %372 : vector<16x64xf32>
    %c0_115 = arith.constant 0 : index
    %c0_116 = arith.constant 0 : index
    %374 = vector.load %arg3[%c0_115, %c0_116] : memref<1x64xf32, #tpu.memory_space<vmem>>, vector<1x64xf32>
    %375 = vector.broadcast %374 : vector<1x64xf32> to vector<16x64xf32>
    %376 = arith.addf %373, %375 : vector<16x64xf32>
    %cst_117 = arith.constant 0.000000e+00 : f32
    %377 = vector.broadcast %cst_117 : f32 to vector<16x64xf32>
    %378 = arith.select %6, %376, %377 : vector<16x64xi1>, vector<16x64xf32>
    %c0_118 = arith.constant 0 : index
    %c0_119 = arith.constant 0 : index
    %c0_120 = arith.constant 0 : index
    %379 = vector.load %arg4[%c0_118, %c0_119, %c0_120] : memref<1x16x64xf32, #tpu.memory_space<vmem>>, vector<1x16x64xf32>
    %380 = vector.shape_cast %379 : vector<1x16x64xf32> to vector<16x64xf32>
    %381 = vector.shape_cast %378 : vector<16x64xf32> to vector<1x16x64xf32>
    tpu.vector_store %arg4[%c0_118, %c0_119, %c0_120], %381 {strides = array<i32>} : memref<1x16x64xf32, #tpu.memory_space<vmem>>, vector<1x16x64xf32>,
    return
  }
  func.func @transform_0(%arg0: i32) -> (i32, i32, i32) {
    %c0_i32 = arith.constant 0 : i32
    %c0_i32_0 = arith.constant 0 : i32
    %c0_i32_1 = arith.constant 0 : i32
    return %arg0, %c0_i32, %c0_i32_0 : i32, i32, i32
  }
  func.func @transform_1(%arg0: i32) -> (i32, i32) {
    %c0_i32 = arith.constant 0 : i32
    %c0_i32_0 = arith.constant 0 : i32
    %c0_i32_1 = arith.constant 0 : i32
    return %c0_i32, %c0_i32_0 : i32, i32
  }
  func.func @transform_2(%arg0: i32) -> (i32, i32) {
    %c0_i32 = arith.constant 0 : i32
    %c0_i32_0 = arith.constant 0 : i32
    %c0_i32_1 = arith.constant 0 : i32
    return %c0_i32, %c0_i32_0 : i32, i32
  }
  func.func @transform_3(%arg0: i32) -> (i32, i32, i32) {
    %c0_i32 = arith.constant 0 : i32
    %c0_i32_0 = arith.constant 0 : i32
    %c0_i32_1 = arith.constant 0 : i32
    return %arg0, %c0_i32, %c0_i32_0 : i32, i32, i32
  }
}

</mosaic_0001>

<bundles_post_ra>
// kernel: tpu_custom_call.1
= control target key start
LH: loop header
LB: loop body
LE: loop exit
PB: predicated region body
PF: predicated region fallthrough
CT: control target
= control target key end

     0   :  { %8 = vsyncpa [#allocation3], 0  ;;  %s1885_s0 = inlined_call_operand.hbm [shape: f32[2,16,64], index: 0, kind: input, shape index: {}]   ;;  %s1886_s1 = inlined_call_operand.hbm [shape: f32[27,64], index: 1, kind: input, shape index: {}]   ;;  %s1887_s2 = inlined_call_operand.vmem [shape: f32[1,64], index: 2, kind: input, shape index: {}]   ;;  %s1888_s3 = inlined_call_operand.hbm [shape: f32[2,16,64], index: 3, kind: output, shape index: {}]  }
   0x1   :  { %10 = vsyncpa [#allocation3 + $0x1], 0 }
   0x2   :  { %11 = vsyncpa [#allocation6], 0 }
   0x3   :  { %12 = vsyncpa [#allocation4], 0 }
   0x4   :  { %14 = vsyncpa [#allocation4 + $0x1], 0  ;;  %s1328_s12 = smov 0   ;;  %s1330_s13 = smov 0  }
   0x5   :  { %s1332_s14 = smov 0   ;;  %s1334_s15 = smov 0  }
   0x6 LB: > { %s1349_s16 = sadd.s32 4294967295, %s1289_s15   ;;  %s1041_s17 = sadd.s32 4294967294, %s1289_s15   ;;  %s1289_s15 = sphi %s1334_s15, %s1912_s15   ;;  %s1285_s14 = sphi %s1332_s14, %s1911_s14   ;;  %s1281_s13 = sphi %s1330_s13, %s1910_s13   ;;  %s1277_s12 = sphi %s1328_s12, %s1909_s12  }
   0x7   : > { %p40_p0 = scmp.ne.s32.totalorder %s1281_s13, %s1277_s12  ;;  %p1889_p1 = scmp.eq.s32.totalorder %s1349_s16, 0 }
   0x8   : > { %p112_p3 = scmp.eq.s32.totalorder %s1041_s17, 1  ;;  %p1042_p5 = scmp.ge.s32.totalorder %s1289_s15, 1 }
   0x9   : > { %p1358_p4 = por %p1889_p1, %p40_p0  ;;  %p119_p7 = scmp.lt.s32.totalorder %s1289_s15, 3 }
   0xa   : > { %p1363_p6 = por %p112_p3, %p40_p0  ;;  %s1291_s21 = smov [#allocation5]  }
   0xb   : > { %s1892_s18 = scalar_select %p1358_p4, 1, 0 }
   0xc   : > { %s1893_s19 = scalar_select %p1363_p6, 1, 0 }
   0xd   : > { %p1368_p8 = pnand %p1042_p5, %p119_p7  ;;  %s131_s22 = sshll.u32 %s1291_s21, 4  ;;  %s1372_s22 = int_to_ptr.vmem [resolvable:$true] %s131_s22 }
   0xe   : > { %s1384_s24 = sadd.s32 1, %s1289_s15   ;;  %s27_s25 = sadd.s32 1, %s1285_s14 }
   0xf   : > { %s1894_s20 = scalar_select %p1368_p8, 1, 0 }
  0x10   : > { %p1096_p9 = pneg %p1368_p8  ;;  %s24_s26 = ssub.s32 %s1289_s15, %s1384_s24 }
  0x11   : > { %s1161_s29 = scalar_lea.hbm %s1886_s1, 512 }
  0x12   : > { %p1379_p11 = pnand %p1096_p9, %p1889_p1  ;;  %p1162_p12 = scmp.ne.s32.totalorder %s1886_s1, %s1161_s29 }
  0x13   : > { %p1168_p5 = scmp.lt.u32.totalorder %s1161_s29, %s1886_s1 }
  0x14   : > { %p1163_p13 = pneg %p1379_p11 }
  0x16   : > { %p1164_p0 = pnand %p1163_p13, %p1162_p12 }
  0x18   : > { %p1165_p3 = pneg %p1164_p0 }
  0x1a   : > { %p1170_p7 = pnand %p1168_p5, %p1165_p3 }
  0x1c   : > { %1173 = shalt.err (!%p1170_p7)
}
  0x1d   : > { %s1174_s7 = scalar_lea.vmem %s1372_s22, 512  ;;  %p1182_p2 = scmp.lt.s32.totalorder %s1372_s22, %s1372_s22 }
  0x1e   : > { %p1175_p9 = scmp.ne.s32.totalorder %s1372_s22, %s1174_s7  ;;  %p1183_p6 = scmp.lt.s32.totalorder %s1174_s7, %s1174_s7 }
  0x20   : > { %p1177_p10 = pnand %p1175_p9, %p1163_p13  ;;  %p1184_p4 = por %p1183_p6, %p1182_p2 }
  0x22   : > { %p1178_p1 = pneg %p1177_p10 }
  0x24   : > { %p1185_p8 = pnand %p1184_p4, %p1178_p1 }
  0x26   : > { %1188 = shalt.err (!%p1185_p8)
}
  0x27   : > { %s1292_s8 = smov 128   ;;  %s1293_s9 = smov 8  }
  0x28   : > { %1099 = dma.hbm_to_vmem [thread:$0]  (!%p1379_p11), %s1886_s1, 512, %s1372_s22, [#allocation6], %s1292_s8, %s1292_s8, %s1293_s9  }
  0x29   : > { %p25_p1 = scmp.eq.s32.totalorder %s24_s26, 0  ;;  %p34_p2 = scmp.ne.s32.totalorder %s1285_s14, %s1281_s13 }
  0x2a   : > { %p35_p4 = scmp.eq.s32.totalorder %s1289_s15, 0  ;;  %p1109_p6 = scmp.lt.s32.totalorder %s1289_s15, 2 }
  0x2b   : > { %s1418_s17 = scalar_select %p25_p1, %s1285_s14, %s27_s25  }
  0x2c   : > { %p36_p8 = por %p35_p4, %p34_p2  ;;  %p1896_p10 = scmp.eq.s32.totalorder %s1349_s16, 1 }
  0x2d   : > { %s148_s23 = sand.u32 1, %s1285_s14   ;;  %s1086_s27 = sshll.u32 %s1289_s15, 8 }
  0x2e   : > { %p1422_p12 = por %p1896_p10, %p34_p2  ;;  %s1045_s28 = sshll.u32 %s148_s23, 4 }
  0x2f   : > { %s1431_s4 = scalar_lea.hbm %s1885_s0, %s1086_s27  ;;  %s152_s22 = scalar_lea.vmem [#allocation2], %s1045_s28 }
  0x30   : > { %s159_s25 = sshll.u32 %s152_s22, 4  ;;  %p1433_p11 = pnand %p1109_p6, %p36_p8  ;;  %s1437_s25 = int_to_ptr.vmem [resolvable:$true] %s159_s25 }
  0x31   : > { %s1439_s5 = scalar_lea.sflag [#allocation3], %s148_s23  ;;  %s1189_s6 = scalar_lea.hbm %s1431_s4, 256 }
  0x32   : > { %p1190_p13 = scmp.ne.s32.totalorder %s1431_s4, %s1189_s6  ;;  %p1191_p0 = pneg %p1433_p11 }
  0x33   : > { %s1194_s11 = scalar_lea.hbm %s1885_s0, 512  ;;  %p1195_p7 = scmp.lt.u32.totalorder %s1431_s4, %s1885_s0 }
  0x34   : > { %p1192_p3 = pnand %p1191_p0, %p1190_p13  ;;  %p1196_p9 = scmp.lt.u32.totalorder %s1194_s11, %s1189_s6 }
  0x35   : > { %p1198_p2 = scmp.lt.u32.totalorder %s1189_s6, %s1431_s4 }
  0x36   : > { %p1193_p5 = pneg %p1192_p3  ;;  %p1197_p1 = por %p1196_p9, %p1195_p7 }
  0x38   : > { %p1199_p4 = por %p1198_p2, %p1197_p1 }
  0x3a   : > { %p1200_p6 = pnand %p1199_p4, %p1193_p5 }
  0x3c   : > { %1203 = shalt.err (!%p1200_p6)
}
  0x3d   : > { %s1204_s23 = scalar_lea.vmem %s1437_s25, 256  ;;  %s1294_s29 = smov [#allocation2]  }
  0x3e   : > { %p1205_p8 = scmp.ne.s32.totalorder %s1437_s25, %s1204_s23  ;;  %s1209_s30 = sshll.u32 %s1294_s29, 4  ;;  %s1210_s30 = int_to_ptr.vmem [resolvable:$false] %s1209_s30 }
  0x3f   : > { %s1211_s22 = scalar_lea.vmem %s1210_s30, 512  ;;  %p1212_p3 = scmp.lt.s32.totalorder %s1437_s25, %s1210_s30 }
  0x40   : > { %p1207_p10 = pnand %p1205_p8, %p1191_p0  ;;  %p1213_p7 = scmp.lt.s32.totalorder %s1211_s22, %s1204_s23 }
  0x42   : > { %p1208_p13 = pneg %p1207_p10  ;;  %p1214_p9 = por %p1213_p7, %p1212_p3 }
  0x44   : > { %p1215_p1 = pnand %p1214_p9, %p1208_p13 }
  0x46   : > { %1218 = shalt.err (!%p1215_p1)
}
  0x47   : > { %1103 = dma.hbm_to_vmem [thread:$0]  (!%p1433_p11), %s1431_s4, 256, %s1437_s25, %s1439_s5, %s1292_s8, %s1292_s8, %s1293_s9  }
  0x48   : > { %p1899_p0 = scmp.ne.s32.totalorder %s1894_s20, 0 }
  0x49   : > { %s1473_s6 = sand.u32 (!%p1899_p0), 1, %s1281_s13   ;;  %p1900_p5 = scmp.ne.s32.totalorder (!%p1899_p0), %s1892_s18, 0 }
  0x4a   : > { %171 = sbr.rel (%p1899_p0) target bundleno = 653 (0x28d), region = 32  ;;  %s1049_s7 = sshll.u32 (!%p1899_p0), %s1473_s6, 4 }
  0x4b   : > { %s174_s10 = scalar_lea.sflag (!%p1899_p0), [#allocation3], %s1473_s6  ;;  %s177_s26 = scalar_lea.vmem (!%p1899_p0), [#allocation2], %s1049_s7 }
  0x51   : > { %1264 = dma.done.wait (%p1900_p5), %s174_s10, 256  }
  0x52   : > { %1266 = vsyncadd (%p1900_p5), %s174_s10, 4294967040  ;;  %p1901_p11 = scmp.eq.s32.totalorder %s1349_s16, 0 }
  0x54   : > { %1268 = dma.done.wait (%p1901_p11), [#allocation6], 512   ;;  %p1902_p2 = pmov %p1901_p11 }
  0x55   : > { %v206_v0 = vlaneseq  ;;  %v204_v15 = vld [vmem:[%s177_s26] sm:$0xff]  ;;  %v205_v16 = vld [vmem:[%s177_s26 + $0x8] sm:$0xff]  ;;  %v1295_v27 = vmov 0.0   ;;  %s1296_s18 = smov 64   ;;  %s1297_s20 = smov 81  }
  0x56   : > { %1270 = vsyncadd (%p1902_p2), [#allocation6], 4294966784  ;;  %s1298_s8 = smov 65   ;;  %s1299_s9 = smov 113  }
  0x57   : > { %v1487_v1 = vshrl.u32 %v206_v0, 7  ;;  %v210_v2 = vand.u32 127, %v206_v0  ;;  %s1300_s4 = smov 80   ;;  %s1301_s25 = smov 112  }
  0x58   : > { %s1302_s5 = smov 79   ;;  %s1303_s11 = smov 127  }
  0x59   : > { %v1490_v3 = vadd.s32 8, %v1487_v1  ;;  %v211_v4 = vand.u32 15, %v210_v2  ;;  %v218_v5 = vsub.s32 0, %v1487_v1  ;;  %v232_v6 = vsub.s32 1, %v1487_v1  ;;  %s1304_s27 = smov 111   ;;  %s1087_s29 = sshll.u32 %s1349_s16, 8 }
  0x5a   : > { %v246_v7 = vsub.s32 2, %v1487_v1  ;;  %v260_v8 = vsub.s32 3, %v1487_v1  ;;  %v274_v9 = vsub.s32 4, %v1487_v1  ;;  %v288_v10 = vsub.s32 5, %v1487_v1  ;;  %s203_s30 = scalar_lea.vmem [#allocation7], %s1049_s7  ;;  %s945_s16 = scalar_lea.sflag [#allocation4], %s1473_s6 }
  0x5b   : > { %vm1499_vm0 = vcmp.le.s32.totalorder %v1487_v1, %v211_v4  ;;  %vm1504_vm1 = vcmp.le.s32.totalorder %v1490_v3, %v211_v4  ;;  %v302_v13 = vsub.s32 6, %v1487_v1  ;;  %v316_v14 = vsub.s32 7, %v1487_v1  ;;  %s958_s22 = sshll.u32 %s203_s30, 4  ;;  %s1838_s22 = int_to_ptr.vmem [resolvable:$true] %s958_s22 }
  0x5c   : > { %v1512_v17 = vsel %vm1499_vm0, %v204_v15, -1e+09  ;;  %v1516_v18 = vsel %vm1504_vm1, %v205_v16, -1e+09  ;;  %s1219_s7 = scalar_lea.vmem %s1838_s22, 256 }
  0x5d   : > { %v219_v19 = vrot.slane %v1512_v17, %v218_v5  ;;  %v233_v20 = vrot.slane %v1512_v17, %v232_v6  ;;  %v247_v21 = vrot.slane %v1512_v17, %v246_v7  ;;  %v261_v22 = vrot.slane %v1512_v17, %v260_v8  ;;  %p1220_p4 = scmp.ne.s32.totalorder %s1838_s22, %s1219_s7 }
  0x5e   : > { %v275_v23 = vrot.slane %v1512_v17, %v274_v9  ;;  %v289_v24 = vrot.slane %v1512_v17, %v288_v10  ;;  %v1539_v25 = vrot.slane %v1512_v17, %v302_v13  ;;  %v1544_v26 = vrot.slane %v1512_v17, %v316_v14 }
  0x5f   : > { %vm220_vm2 = vcmp.ge.f32.partialorder %v219_v19, %v1512_v17  ;;  %vm221_vm3 = vcmp.ge.f32.partialorder %v219_v19, %v1516_v18  ;;  %vm234_vm4 = vcmp.ge.f32.partialorder %v233_v20, %v1512_v17  ;;  %vm235_vm5 = vcmp.ge.f32.partialorder %v233_v20, %v1516_v18  ;;  %p1221_p6 = pnand %p1220_p4, %p1422_p12 }
  0x60   : > { %v222_v28 = vsel %vm220_vm2, 1.0, %v1295_v27  ;;  %v223_v29 = vsel %vm221_vm3, 1.0, %v1295_v27  ;;  %v226_v30 = vsel %vm220_vm2, %v219_v19, 0.0  ;;  %v227_v31 = vsel %vm221_vm3, %v219_v19, 0.0 }
  0x61   : > { %v236_v32 = vsel %vm234_vm4, 1.0, %v1295_v27  ;;  %v237_v33 = vsel %vm235_vm5, 1.0, %v1295_v27  ;;  %v240_v34 = vsel %vm234_vm4, %v233_v20, 0.0  ;;  %v241_v35 = vsel %vm235_vm5, %v233_v20, 0.0  ;;  %p1222_p8 = pneg %p1221_p6 }
  0x62   : > { %v238_v36 = vadd.f32 %v236_v32, %v222_v28  ;;  %v239_v37 = vadd.f32 %v237_v33, %v223_v29  ;;  %v242_v38 = vadd.f32 %v240_v34, %v226_v30  ;;  %v243_v39 = vadd.f32 %v241_v35, %v227_v31 }
  0x63   : > { %vm248_vm6 = vcmp.ge.f32.partialorder %v247_v21, %v1512_v17  ;;  %vm249_vm7 = vcmp.ge.f32.partialorder %v247_v21, %v1516_v18  ;;  %vm262_vm8 = vcmp.ge.f32.partialorder %v261_v22, %v1512_v17  ;;  %vm263_vm9 = vcmp.ge.f32.partialorder %v261_v22, %v1516_v18 }
  0x64   : > { %v250_v40 = vsel %vm248_vm6, 1.0, %v1295_v27  ;;  %v251_v41 = vsel %vm249_vm7, 1.0, %v1295_v27  ;;  %v254_v42 = vsel %vm248_vm6, %v247_v21, 0.0  ;;  %v255_v43 = vsel %vm249_vm7, %v247_v21, 0.0 }
  0x65   : > { %v252_v44 = vadd.f32 %v250_v40, %v238_v36  ;;  %v253_v45 = vadd.f32 %v251_v41, %v239_v37  ;;  %v256_v46 = vadd.f32 %v254_v42, %v242_v38  ;;  %v257_v47 = vadd.f32 %v255_v43, %v243_v39 }
  0x66   : > { %v264_v48 = vsel %vm262_vm8, 1.0, %v1295_v27  ;;  %v265_v49 = vsel %vm263_vm9, 1.0, %v1295_v27  ;;  %v268_v50 = vsel %vm262_vm8, %v261_v22, 0.0  ;;  %v269_v51 = vsel %vm263_vm9, %v261_v22, 0.0 }
  0x67   : > { %v266_v52 = vadd.f32 %v264_v48, %v252_v44  ;;  %v267_v53 = vadd.f32 %v265_v49, %v253_v45  ;;  %v270_v54 = vadd.f32 %v268_v50, %v256_v46  ;;  %v271_v55 = vadd.f32 %v269_v51, %v257_v47 }
  0x68   : > { %vm276_vm10 = vcmp.ge.f32.partialorder %v275_v23, %v1512_v17  ;;  %vm277_vm11 = vcmp.ge.f32.partialorder %v275_v23, %v1516_v18  ;;  %vm290_vm12 = vcmp.ge.f32.partialorder %v289_v24, %v1512_v17  ;;  %vm291_vm13 = vcmp.ge.f32.partialorder %v289_v24, %v1516_v18 }
  0x69   : > { %v278_v56 = vsel %vm276_vm10, 1.0, %v1295_v27  ;;  %v279_v57 = vsel %vm277_vm11, 1.0, %v1295_v27  ;;  %v282_v58 = vsel %vm276_vm10, %v275_v23, 0.0  ;;  %v283_v59 = vsel %vm277_vm11, %v275_v23, 0.0 }
  0x6a   : > { %v280_v60 = vadd.f32 %v278_v56, %v266_v52  ;;  %v281_v61 = vadd.f32 %v279_v57, %v267_v53  ;;  %v284_v62 = vadd.f32 %v282_v58, %v270_v54  ;;  %v285_v63 = vadd.f32 %v283_v59, %v271_v55 }
  0x6b   : > { %v292_v0 = vsel %vm290_vm12, 1.0, %v1295_v27  ;;  %v293_v2 = vsel %vm291_vm13, 1.0, %v1295_v27  ;;  %v296_v4 = vsel %vm290_vm12, %v289_v24, 0.0  ;;  %v297_v15 = vsel %vm291_vm13, %v289_v24, 0.0 }
  0x6c   : > { %v294_v16 = vadd.f32 %v292_v0, %v280_v60  ;;  %v295_v19 = vadd.f32 %v293_v2, %v281_v61  ;;  %v298_v20 = vadd.f32 %v296_v4, %v284_v62  ;;  %v299_v21 = vadd.f32 %v297_v15, %v285_v63 }
  0x6d   : > { %vm304_vm14 = vcmp.ge.f32.partialorder %v1539_v25, %v1512_v17  ;;  %vm305_vm15 = vcmp.ge.f32.partialorder %v1539_v25, %v1516_v18  ;;  %vm318_vm2 = vcmp.ge.f32.partialorder %v1544_v26, %v1512_v17  ;;  %vm319_vm3 = vcmp.ge.f32.partialorder %v1544_v26, %v1516_v18 }
  0x6e   : > { %v306_v22 = vsel %vm304_vm14, 1.0, %v1295_v27  ;;  %v307_v23 = vsel %vm305_vm15, 1.0, %v1295_v27  ;;  %v310_v24 = vsel %vm304_vm14, %v1539_v25, 0.0  ;;  %v311_v28 = vsel %vm305_vm15, %v1539_v25, 0.0 }
  0x6f   : > { %v308_v29 = vadd.f32 %v306_v22, %v294_v16  ;;  %v309_v30 = vadd.f32 %v307_v23, %v295_v19  ;;  %v312_v31 = vadd.f32 %v310_v24, %v298_v20  ;;  %v313_v32 = vadd.f32 %v311_v28, %v299_v21 }
  0x70   : > { %v320_v33 = vsel %vm318_vm2, 1.0, %v1295_v27  ;;  %v321_v34 = vsel %vm319_vm3, 1.0, %v1295_v27  ;;  %v324_v35 = vsel %vm318_vm2, %v1544_v26, 0.0  ;;  %v325_v36 = vsel %vm319_vm3, %v1544_v26, 0.0 }
  0x71   : > { %v322_v37 = vadd.f32 %v320_v33, %v308_v29  ;;  %v323_v38 = vadd.f32 %v321_v34, %v309_v30  ;;  %v326_v39 = vadd.f32 %v324_v35, %v312_v31  ;;  %v327_v40 = vadd.f32 %v325_v36, %v313_v32 }
  0x72   : > { %v331_v25 = vrot.slane %v1516_v18, %v218_v5  ;;  %v345_v41 = vrot.slane %v1516_v18, %v232_v6  ;;  %v359_v42 = vrot.slane %v1516_v18, %v246_v7  ;;  %v373_v26 = vrot.slane %v1516_v18, %v260_v8 }
  0x73   : > { %v387_v43 = vrot.slane %v1516_v18, %v274_v9  ;;  %v401_v5 = vrot.slane %v1516_v18, %v288_v10  ;;  %v1607_v6 = vrot.slane %v1516_v18, %v302_v13  ;;  %v1612_v7 = vrot.slane %v1516_v18, %v316_v14 }
  0x74   : > { %vm332_vm4 = vcmp.ge.f32.partialorder %v331_v25, %v1512_v17  ;;  %vm333_vm5 = vcmp.ge.f32.partialorder %v331_v25, %v1516_v18  ;;  %vm346_vm6 = vcmp.ge.f32.partialorder %v345_v41, %v1512_v17  ;;  %vm347_vm7 = vcmp.ge.f32.partialorder %v345_v41, %v1516_v18 }
  0x75   : > { %v334_v8 = vsel %vm332_vm4, 1.0, %v1295_v27  ;;  %v335_v9 = vsel %vm333_vm5, 1.0, %v1295_v27  ;;  %v338_v10 = vsel %vm332_vm4, %v331_v25, 0.0  ;;  %v339_v13 = vsel %vm333_vm5, %v331_v25, 0.0 }
  0x76   : > { %v336_v44 = vadd.f32 %v334_v8, %v322_v37  ;;  %v337_v45 = vadd.f32 %v335_v9, %v323_v38  ;;  %v340_v46 = vadd.f32 %v338_v10, %v326_v39  ;;  %v341_v47 = vadd.f32 %v339_v13, %v327_v40 }
  0x77   : > { %v348_v14 = vsel %vm346_vm6, 1.0, %v1295_v27  ;;  %v349_v48 = vsel %vm347_vm7, 1.0, %v1295_v27  ;;  %v352_v49 = vsel %vm346_vm6, %v345_v41, 0.0  ;;  %v353_v50 = vsel %vm347_vm7, %v345_v41, 0.0 }
  0x78   : > { %v350_v51 = vadd.f32 %v348_v14, %v336_v44  ;;  %v351_v52 = vadd.f32 %v349_v48, %v337_v45  ;;  %v354_v53 = vadd.f32 %v352_v49, %v340_v46  ;;  %v355_v54 = vadd.f32 %v353_v50, %v341_v47 }
  0x79   : > { %vm360_vm8 = vcmp.ge.f32.partialorder %v359_v42, %v1512_v17  ;;  %vm361_vm9 = vcmp.ge.f32.partialorder %v359_v42, %v1516_v18  ;;  %vm374_vm10 = vcmp.ge.f32.partialorder %v373_v26, %v1512_v17  ;;  %vm375_vm11 = vcmp.ge.f32.partialorder %v373_v26, %v1516_v18 }
  0x7a   : > { %v362_v55 = vsel %vm360_vm8, 1.0, %v1295_v27  ;;  %v363_v56 = vsel %vm361_vm9, 1.0, %v1295_v27  ;;  %v366_v57 = vsel %vm360_vm8, %v359_v42, 0.0  ;;  %v367_v58 = vsel %vm361_vm9, %v359_v42, 0.0 }
  0x7b   : > { %v364_v59 = vadd.f32 %v362_v55, %v350_v51  ;;  %v365_v60 = vadd.f32 %v363_v56, %v351_v52  ;;  %v368_v61 = vadd.f32 %v366_v57, %v354_v53  ;;  %v369_v62 = vadd.f32 %v367_v58, %v355_v54 }
  0x7c   : > { %v376_v63 = vsel %vm374_vm10, 1.0, %v1295_v27  ;;  %v377_v0 = vsel %vm375_vm11, 1.0, %v1295_v27  ;;  %v380_v2 = vsel %vm374_vm10, %v373_v26, 0.0  ;;  %v381_v4 = vsel %vm375_vm11, %v373_v26, 0.0 }
  0x7d   : > { %v378_v15 = vadd.f32 %v376_v63, %v364_v59  ;;  %v379_v16 = vadd.f32 %v377_v0, %v365_v60  ;;  %v382_v19 = vadd.f32 %v380_v2, %v368_v61  ;;  %v383_v20 = vadd.f32 %v381_v4, %v369_v62 }
  0x7e   : > { %vm388_vm12 = vcmp.ge.f32.partialorder %v387_v43, %v1512_v17  ;;  %vm389_vm13 = vcmp.ge.f32.partialorder %v387_v43, %v1516_v18  ;;  %vm402_vm14 = vcmp.ge.f32.partialorder %v401_v5, %v1512_v17  ;;  %vm403_vm15 = vcmp.ge.f32.partialorder %v401_v5, %v1516_v18 }
  0x7f   : > { %v390_v21 = vsel %vm388_vm12, 1.0, %v1295_v27  ;;  %v391_v22 = vsel %vm389_vm13, 1.0, %v1295_v27  ;;  %v394_v23 = vsel %vm388_vm12, %v387_v43, 0.0  ;;  %v395_v24 = vsel %vm389_vm13, %v387_v43, 0.0 }
  0x80   : > { %v392_v28 = vadd.f32 %v390_v21, %v378_v15  ;;  %v393_v29 = vadd.f32 %v391_v22, %v379_v16  ;;  %v396_v30 = vadd.f32 %v394_v23, %v382_v19  ;;  %v397_v31 = vadd.f32 %v395_v24, %v383_v20 }
  0x81   : > { %v404_v32 = vsel %vm402_vm14, 1.0, %v1295_v27  ;;  %v405_v33 = vsel %vm403_vm15, 1.0, %v1295_v27  ;;  %v408_v34 = vsel %vm402_vm14, %v401_v5, 0.0  ;;  %v409_v35 = vsel %vm403_vm15, %v401_v5, 0.0 }
  0x82   : > { %v406_v36 = vadd.f32 %v404_v32, %v392_v28  ;;  %v407_v37 = vadd.f32 %v405_v33, %v393_v29  ;;  %v410_v38 = vadd.f32 %v408_v34, %v396_v30  ;;  %v411_v39 = vadd.f32 %v409_v35, %v397_v31 }
  0x83   : > { %vm416_vm2 = vcmp.ge.f32.partialorder %v1607_v6, %v1512_v17  ;;  %vm417_vm3 = vcmp.ge.f32.partialorder %v1607_v6, %v1516_v18  ;;  %vm430_vm4 = vcmp.ge.f32.partialorder %v1612_v7, %v1512_v17  ;;  %vm431_vm5 = vcmp.ge.f32.partialorder %v1612_v7, %v1516_v18 }
  0x84   : > { %v418_v40 = vsel %vm416_vm2, 1.0, %v1295_v27  ;;  %v419_v25 = vsel %vm417_vm3, 1.0, %v1295_v27  ;;  %v422_v41 = vsel %vm416_vm2, %v1607_v6, 0.0  ;;  %v423_v42 = vsel %vm417_vm3, %v1607_v6, 0.0 }
  0x85   : > { %v420_v26 = vadd.f32 %v418_v40, %v406_v36  ;;  %v421_v43 = vadd.f32 %v419_v25, %v407_v37  ;;  %v424_v5 = vadd.f32 %v422_v41, %v410_v38  ;;  %v425_v8 = vadd.f32 %v423_v42, %v411_v39 }
  0x86   : > { %v432_v9 = vsel %vm430_vm4, 1.0, %v1295_v27  ;;  %v433_v10 = vsel %vm431_vm5, 1.0, %v1295_v27  ;;  %v436_v13 = vsel %vm430_vm4, %v1612_v7, 0.0  ;;  %v437_v44 = vsel %vm431_vm5, %v1612_v7, 0.0 }
  0x87   : > { %v434_v45 = vadd.f32 %v432_v9, %v420_v26  ;;  %v435_v46 = vadd.f32 %v433_v10, %v421_v43  ;;  %v438_v47 = vadd.f32 %v436_v13, %v424_v5  ;;  %v439_v14 = vadd.f32 %v437_v44, %v425_v8 }
  0x88   : > { %vm446_vm6 = vcmp.gt.f32.partialorder %v1512_v17, -1e+08  ;;  %vm447_vm7 = vcmp.gt.f32.partialorder %v1516_v18, -1e+08  ;;  %vm452_vm10 = vcmask 523264   ;;  %vm485_vm14 = vcmp.lt.s32.totalorder %v1487_v1, 1 }
  0x89   : > { %v440_v48 = vmul.f32 %v434_v45, %v1512_v17  ;;  %v441_v6 = vmul.f32 %v435_v46, %v1516_v18  ;;  %vm488_vm15 = vcmp.ge.s32.totalorder %v1487_v1, 1  ;;  %vm785_vm2 = vcmp.lt.s32.totalorder %v1490_v3, 15 }
  0x8a   : > { %vm781_vm3 = vcmp.lt.s32.totalorder %v1487_v1, 7  ;;  %vm492_vm4 = vcmask 1048064  }
  0x8b   : > { %v442_v49 = vadd.f32 1.0, %v440_v48  ;;  %v443_v50 = vadd.f32 1.0, %v441_v6 }
  0x8d   : > { %vm444_vm8 = vcmp.gt.f32.partialorder %v442_v49, %v438_v47  ;;  %vm445_vm9 = vcmp.gt.f32.partialorder %v443_v50, %v439_v14 }
  0x8e   : > { %vm448_vm11 = vmand %vm444_vm8, %vm446_vm6 }
  0x8f   : > { %vm449_vm12 = vmand %vm445_vm9, %vm447_vm7  ;;  %v450_v7 = vsel %vm448_vm11, 1.0, %v1295_v27 }
  0x90   : > { %v451_v51 = vsel %vm449_vm12, 1.0, %v1295_v27  ;;  %v453_v52 = vsel %vm452_vm10, %v450_v7, 0.0  ;;  %v462_v53 = vmul.f32 %v450_v7, %v1512_v17 }
  0x91   : > { %v454_v54 = vsel %vm452_vm10, %v451_v51, 0.0  ;;  %v463_v55 = vmul.f32 %v451_v51, %v1516_v18 }
  0x92   : > { %v455_v56 = vadd.f32 %v454_v54, %v453_v52  ;;  %v464_v57 = vsel %vm452_vm10, %v462_v53, 0.0 }
  0x93   : > { %v465_v58 = vsel %vm452_vm10, %v463_v55, 0.0 }
  0x94   : > { %v456_v59 = vrot.slane %v455_v56, 4  ;;  %v466_v60 = vadd.f32 %v465_v58, %v464_v57 }
  0x96   : > { %v457_v61 = vadd.f32 %v456_v59, %v455_v56  ;;  %v467_v62 = vrot.slane %v466_v60, 4 }
  0x98   : > { %v458_v63 = vrot.slane %v457_v61, 2  ;;  %v468_v0 = vadd.f32 %v467_v62, %v466_v60 }
  0x9a   : > { %v459_v27 = vadd.f32 %v458_v63, %v457_v61  ;;  %v469_v2 = vrot.slane %v468_v0, 2 }
  0x9c   : > { %v460_v4 = vrot.slane %v459_v27, 1  ;;  %v470_v15 = vadd.f32 %v469_v2, %v468_v0 }
  0x9e   : > { %v461_v16 = vadd.f32 %v460_v4, %v459_v27  ;;  %v471_v20 = vrot.slane %v470_v15, 1 }
  0xa0   : > { %v473_v19 = vmax.f32 %v461_v16, 1.0  ;;  %v472_v21 = vadd.f32 %v471_v20, %v470_v15  ;;  %vm477_vm13 = vcmp.eq.f32.partialorder %v461_v16, 0.0  ;;  %v1053_v20 = vld [vmem:[#allocation5] ss:$0 sm:$0xff] }
  0xa2   : > { %1159 = vrcp.f32 %v473_v19  ;;  %v1052_v22 = vadd.f32 -1.0, %v472_v21  ;;  %v1054_v19 = vld [vmem:[#allocation5 + $0x1] ss:$0 sm:$0xff] }
  0xac   : > { %v1160_v23 = vpop.eup %1159 }
  0xad   : > { %v476_v24 = vmul.f32 %v1160_v23, %v1052_v22  ;;  %v1055_v22 = vld [vmem:[#allocation5 + $0x2] ss:$0 sm:$0xff] }
  0xaf   : > { %v478_v28 = vsel %vm477_vm13, 1e+30, %v476_v24 }
  0xb0   : > { %v479_v29 = vsub.f32 %v1512_v17, %v478_v28  ;;  %v480_v30 = vsub.f32 %v1516_v18, %v478_v28  ;;  %v1056_v28 = vld [vmem:[#allocation5 + $0x3] ss:$0 sm:$0xff] }
  0xb2   : > { %v1668_v31 = vmax.f32 %v479_v29, 0.0  ;;  %v1670_v32 = vmax.f32 %v480_v30, 0.0 }
  0xb4   : > { %v483_v33 = vrot.slane %v1668_v31, 7  ;;  %v484_v34 = vrot.slane %v1670_v32, 7  ;;  %636 = vrot.lane.b32.xlu1 %v1668_v31, %s1296_s18  ;;  %v779_v17 = vrot.slane %v1668_v31, 1  ;;  %v780_v18 = vrot.slane %v1670_v32, 1 }
  0xb6   : > { %v487_v35 = vsel %vm485_vm14, %v484_v34, %v483_v33  ;;  %v783_v36 = vsel %vm781_vm3, %v780_v18, %v779_v17  ;;  %v1694_v38 = vsel %vm485_vm14, %v483_v33, %v484_v34  ;;  %v1700_v39 = vsel %vm781_vm3, %v779_v17, %v780_v18 }
  0xb7   : > { %v1684_v37 = vsel %vm488_vm15, %v487_v35, 0.0  ;;  %v1686_v3 = vsel %vm785_vm2, %v783_v36, 0.0  ;;  %v1057_v36 = vld [vmem:[#allocation5 + $0x4] ss:$0 sm:$0xff] }
  0xb8   : > { %493 = vrot.lane.b32.xlu0 %v1684_v37, %s1296_s18  ;;  %639 = vrot.lane.b32.xlu1 %v1670_v32, %s1296_s18 }
  0xbc   : > { %496 = vrot.lane.b32.xlu0 %v1694_v38, %s1296_s18  ;;  %791 = vrot.lane.b32.xlu1 %v1686_v3, %s1296_s18 }
  0xc0   : > { %788 = vrot.lane.b32.xlu0 %v1700_v39, %s1296_s18 }
 0x126   : > { %v637_v40 = vpop.permute.xlu1 %636 }
 0x127   : > { %v638_v1 = vsel %vm492_vm4, %v637_v40, %v1668_v31 }
 0x12a   : > { %v494_v25 = vpop.permute.xlu0 %493  ;;  %v640_v26 = vpop.permute.xlu1 %639 }
 0x12b   : > { %v495_v41 = vsel %vm492_vm4, %v494_v25, %v1684_v37  ;;  %v641_v5 = vsel %vm492_vm4, %v640_v26, %v1670_v32 }
 0x12c   : > { %499 = vrot.lane.b32.xlu0 %v495_v41, %s1296_s18 }
 0x12e   : > { %v497_v42 = vpop.permute.xlu0 %496  ;;  %v792_v9 = vpop.permute.xlu1 %791 }
 0x12f   : > { %v498_v43 = vsel %vm492_vm4, %v497_v42, %v1694_v38  ;;  %v793_v13 = vsel %vm492_vm4, %v792_v9, %v1686_v3  ;;  %v1058_v9 = vld [vmem:[#allocation5 + $0x5] ss:$0 sm:$0xff] }
 0x130   : > { %642 = vrot.lane.b32.xlu0 %v638_v1, %s1296_s18  ;;  %501 = vrot.lane.b32.xlu1 %v498_v43, %s1296_s18 }
 0x132   : > { %v789_v8 = vpop.permute.xlu0 %788 }
 0x133   : > { %v790_v10 = vsel %vm492_vm4, %v789_v8, %v1700_v39  ;;  %v572_v8 = vmul.f32 %v1057_v36, %v1684_v37 }
 0x134   : > { %644 = vrot.lane.b32.xlu1 %v641_v5, %s1296_s18  ;;  %794 = vrot.lane.b32.xlu0 %v790_v10, %s1296_s18 }
 0x138   : > { %796 = vrot.lane.b32.xlu1 %v793_v13, %s1296_s18  ;;  %s1836_s18 = scalar_lea.hbm %s1888_s3, %s1087_s29 }
 0x19e   : > { %v500_v44 = vpop.permute.xlu0 %499 }
 0x19f   : > { %v503_v6 = vsel %vm492_vm4, %v500_v44, %v1684_v37  ;;  %v1059_v44 = vld [vmem:[#allocation5 + $0x6] ss:$0 sm:$0xff] }
 0x1a2   : > { %v502_v45 = vpop.permute.xlu1 %501  ;;  %v643_v46 = vpop.permute.xlu0 %642 }
 0x1a3   : > { %v646_v47 = vsel %vm492_vm4, %v643_v46, %v1668_v31  ;;  %v504_v49 = vsel %vm492_vm4, %v502_v45, %v1694_v38 }
 0x1a4   : > { %655 = vrot.lane.b32.xlu0 %v646_v47, %s1297_s20 }
 0x1a6   : > { %v645_v14 = vpop.permute.xlu1 %644  ;;  %v795_v50 = vpop.permute.xlu0 %794 }
 0x1a7   : > { %v647_v48 = vsel %vm492_vm4, %v645_v14, %v1670_v32  ;;  %v798_v7 = vsel %vm492_vm4, %v795_v50, %v1700_v39 }
 0x1a8   : > { %657 = vrot.lane.b32.xlu1 %v647_v48, %s1297_s20  ;;  %670 = vrot.lane.b32.xlu0 %v646_v47, %s1298_s8 }
 0x1aa   : > { %v797_v51 = vpop.permute.xlu1 %796 }
 0x1ab   : > { %v799_v52 = vsel %vm492_vm4, %v797_v51, %v1686_v3 }
 0x1ac   : > { %672 = vrot.lane.b32.xlu1 %v647_v48, %s1298_s8  ;;  %685 = vrot.lane.b32.xlu0 %v646_v47, %s1299_s9 }
 0x1b0   : > { %687 = vrot.lane.b32.xlu1 %v647_v48, %s1299_s9  ;;  %700 = vrot.lane.b32.xlu0 %v646_v47, %s1300_s4 }
 0x1b4   : > { %702 = vrot.lane.b32.xlu1 %v647_v48, %s1300_s4  ;;  %724 = vrot.lane.b32.xlu0 %v646_v47, %s1301_s25 }
 0x1b8   : > { %726 = vrot.lane.b32.xlu1 %v647_v48, %s1301_s25  ;;  %739 = vrot.lane.b32.xlu0 %v646_v47, %s1302_s5 }
 0x1bc   : > { %741 = vrot.lane.b32.xlu1 %v647_v48, %s1302_s5  ;;  %754 = vrot.lane.b32.xlu0 %v646_v47, %s1303_s11 }
 0x1c0   : > { %756 = vrot.lane.b32.xlu1 %v647_v48, %s1303_s11  ;;  %512 = vrot.lane.b32.xlu0 %v503_v6, %s1297_s20 }
 0x1c4   : > { %514 = vrot.lane.b32.xlu1 %v504_v49, %s1297_s20  ;;  %527 = vrot.lane.b32.xlu0 %v503_v6, %s1298_s8 }
 0x1c8   : > { %529 = vrot.lane.b32.xlu1 %v504_v49, %s1298_s8  ;;  %542 = vrot.lane.b32.xlu0 %v503_v6, %s1299_s9 }
 0x1cc   : > { %544 = vrot.lane.b32.xlu1 %v504_v49, %s1299_s9  ;;  %557 = vrot.lane.b32.xlu0 %v503_v6, %s1300_s4 }
 0x1d0   : > { %559 = vrot.lane.b32.xlu1 %v504_v49, %s1300_s4  ;;  %581 = vrot.lane.b32.xlu0 %v503_v6, %s1301_s25 }
 0x1d4   : > { %583 = vrot.lane.b32.xlu1 %v504_v49, %s1301_s25  ;;  %596 = vrot.lane.b32.xlu0 %v503_v6, %s1302_s5 }
 0x1d8   : > { %598 = vrot.lane.b32.xlu1 %v504_v49, %s1302_s5  ;;  %611 = vrot.lane.b32.xlu0 %v503_v6, %s1303_s11 }
 0x1dc   : > { %613 = vrot.lane.b32.xlu1 %v504_v49, %s1303_s11  ;;  %626 = vrot.lane.b32.xlu0 %v503_v6, %s1304_s27  ;;  %v1060_v6 = vld [vmem:[#allocation5 + $0x7] ss:$0 sm:$0xff] }
 0x1e0   : > { %628 = vrot.lane.b32.xlu1 %v504_v49, %s1304_s27  ;;  %769 = vrot.lane.b32.xlu0 %v646_v47, %s1304_s27 }
 0x1e4   : > { %771 = vrot.lane.b32.xlu1 %v647_v48, %s1304_s27  ;;  %807 = vrot.lane.b32.xlu0 %v798_v7, %s1297_s20  ;;  %v573_v48 = vmul.f32 %v1057_v36, %v1694_v38 }
 0x1e8   : > { %809 = vrot.lane.b32.xlu1 %v799_v52, %s1297_s20  ;;  %822 = vrot.lane.b32.xlu0 %v798_v7, %s1298_s8  ;;  %s1305_s20 = smov [#allocation7]  }
 0x1ec   : > { %824 = vrot.lane.b32.xlu1 %v799_v52, %s1298_s8  ;;  %837 = vrot.lane.b32.xlu0 %v798_v7, %s1299_s9  ;;  %s1223_s8 = sshll.u32 %s1305_s20, 4  ;;  %s1224_s8 = int_to_ptr.vmem [resolvable:$false] %s1223_s8 }
 0x1ed   : > { %p1226_p10 = scmp.lt.s32.totalorder %s1838_s22, %s1224_s8 }
 0x1f0   : > { %839 = vrot.lane.b32.xlu1 %v799_v52, %s1299_s9  ;;  %852 = vrot.lane.b32.xlu0 %v798_v7, %s1300_s4  ;;  %s1225_s9 = scalar_lea.vmem %s1224_s8, 512 }
 0x1f1   : > { %p1227_p13 = scmp.lt.s32.totalorder %s1225_s9, %s1219_s7 }
 0x1f3   : > { %p1228_p3 = por %p1227_p13, %p1226_p10 }
 0x1f4   : > { %854 = vrot.lane.b32.xlu1 %v799_v52, %s1300_s4  ;;  %876 = vrot.lane.b32.xlu0 %v798_v7, %s1301_s25 }
 0x1f5   : > { %p1229_p7 = pnand %p1228_p3, %p1222_p8 }
 0x1f8   : > { %878 = vrot.lane.b32.xlu1 %v799_v52, %s1301_s25  ;;  %891 = vrot.lane.b32.xlu0 %v798_v7, %s1302_s5 }
 0x1fc   : > { %893 = vrot.lane.b32.xlu1 %v799_v52, %s1302_s5  ;;  %906 = vrot.lane.b32.xlu0 %v798_v7, %s1303_s11 }
 0x200   : > { %908 = vrot.lane.b32.xlu1 %v799_v52, %s1303_s11  ;;  %921 = vrot.lane.b32.xlu0 %v798_v7, %s1304_s27 }
 0x204   : > { %923 = vrot.lane.b32.xlu1 %v799_v52, %s1304_s27 }
 0x216   : > { %v1776_v53 = vpop.permute.xlu0 %655 }
 0x21a   : > { %v1778_v54 = vpop.permute.xlu1 %657  ;;  %v1780_v55 = vpop.permute.xlu0 %670 }
 0x21e   : > { %v1782_v56 = vpop.permute.xlu1 %672  ;;  %v1784_v57 = vpop.permute.xlu0 %685 }
 0x222   : > { %v1786_v58 = vpop.permute.xlu1 %687  ;;  %v1788_v59 = vpop.permute.xlu0 %700 }
 0x226   : > { %v1790_v60 = vpop.permute.xlu1 %702  ;;  %v1792_v61 = vpop.permute.xlu0 %724 }
 0x22a   : > { %v1794_v62 = vpop.permute.xlu1 %726  ;;  %v1796_v63 = vpop.permute.xlu0 %739 }
 0x22e   : > { %v1798_v0 = vpop.permute.xlu1 %741  ;;  %v1800_v27 = vpop.permute.xlu0 %754 }
 0x232   : > { %v1802_v2 = vpop.permute.xlu1 %756  ;;  %v513_v4 = vpop.permute.xlu0 %512 }
 0x233   : > { %v518_v29 = vmul.f32 %v1053_v20, %v513_v4 }
 0x236   : > { %v515_v15 = vpop.permute.xlu1 %514  ;;  %v528_v16 = vpop.permute.xlu0 %527 }
 0x237   : > { %v533_v24 = vmul.f32 %v1054_v19, %v528_v16  ;;  %v519_v40 = vmul.f32 %v1053_v20, %v515_v15  ;;  %v1061_v16 = vld [vmem:[#allocation5 + $0x8] ss:$0 sm:$0xff]  ;;  %v1062_v20 = vld [vmem:[#allocation5 + $0x9] ss:$0 sm:$0xff] }
 0x238   : > { %v661_v38 = vmul.f32 %v1062_v20, %v1776_v53 }
 0x239   : > { %v535_v17 = vadd.f32 %v533_v24, %v518_v29 }
 0x23a   : > { %v530_v21 = vpop.permute.xlu1 %529  ;;  %v543_v23 = vpop.permute.xlu0 %542 }
 0x23b   : > { %v548_v30 = vmul.f32 %v1055_v22, %v543_v23  ;;  %v534_v18 = vmul.f32 %v1054_v19, %v530_v21 }
 0x23d   : > { %v550_v25 = vadd.f32 %v548_v30, %v535_v17  ;;  %v536_v26 = vadd.f32 %v534_v18, %v519_v40  ;;  %v1063_v30 = vld [vmem:[#allocation5 + $0xa] ss:$0 sm:$0xff]  ;;  %v1064_v17 = vld [vmem:[#allocation5 + $0xb] ss:$0 sm:$0xff] }
 0x23e   : > { %v545_v33 = vpop.permute.xlu1 %544  ;;  %v558_v34 = vpop.permute.xlu0 %557  ;;  %v676_v36 = vmul.f32 %v1063_v30, %v1780_v55 }
 0x23f   : > { %v563_v35 = vmul.f32 %v1056_v28, %v558_v34  ;;  %v549_v41 = vmul.f32 %v1055_v22, %v545_v33 }
 0x241   : > { %v565_v43 = vadd.f32 %v563_v35, %v550_v25  ;;  %v551_v10 = vadd.f32 %v549_v41, %v536_v26  ;;  %v662_v26 = vmul.f32 %v1062_v20, %v1778_v54  ;;  %v1068_v54 = vld [vmem:[#allocation5 + $0xf] ss:$0 sm:$0xff] }
 0x242   : > { %v560_v1 = vpop.permute.xlu1 %559  ;;  %v582_v42 = vpop.permute.xlu0 %581 }
 0x243   : > { %v564_v5 = vmul.f32 %v1056_v28, %v560_v1  ;;  %v574_v47 = vadd.f32 %v572_v8, %v565_v43  ;;  %v587_v14 = vmul.f32 %v1058_v9, %v582_v42  ;;  %v1066_v1 = vld [vmem:[#allocation5 + $0xd] ss:$0 sm:$0xff]  ;;  %v1065_v42 = vld [vmem:[#allocation5 + $0xc] ss:$0 sm:$0xff]  ;;  %v691_v43 = vmul.f32 %v1064_v17, %v1784_v57 }
 0x244   : > { %v715_v53 = vmul.f32 %v1066_v1, %v1668_v31  ;;  %v716_v57 = vmul.f32 %v1066_v1, %v1670_v32  ;;  %v707_v31 = vmul.f32 %v1065_v42, %v1790_v60  ;;  %v746_v60 = vmul.f32 %v1068_v54, %v1798_v0 }
 0x245   : > { %v566_v46 = vadd.f32 %v564_v5, %v551_v10  ;;  %v589_v51 = vadd.f32 %v587_v14, %v574_v47  ;;  %v692_v47 = vmul.f32 %v1064_v17, %v1786_v58 }
 0x246   : > { %v584_v13 = vpop.permute.xlu1 %583  ;;  %v597_v45 = vpop.permute.xlu0 %596 }
 0x247   : > { %v602_v49 = vmul.f32 %v1059_v44, %v597_v45  ;;  %v575_v52 = vadd.f32 %v573_v48, %v566_v46  ;;  %v588_v4 = vmul.f32 %v1058_v9, %v584_v13  ;;  %v677_v13 = vmul.f32 %v1063_v30, %v1782_v56  ;;  %v1067_v46 = vld [vmem:[#allocation5 + $0xe] ss:$0 sm:$0xff] }
 0x249   : > { %v604_v37 = vadd.f32 %v602_v49, %v589_v51  ;;  %v590_v23 = vadd.f32 %v588_v4, %v575_v52  ;;  %v1069_v51 = vld [vmem:[#allocation5 + $0x10] ss:$0 sm:$0xff] }
 0x24a   : > { %v599_v50 = vpop.permute.xlu1 %598  ;;  %v612_v7 = vpop.permute.xlu0 %611  ;;  %v760_v32 = vmul.f32 %v1069_v51, %v1800_v27 }
 0x24b   : > { %v617_v15 = vmul.f32 %v1060_v6, %v612_v7  ;;  %v603_v19 = vmul.f32 %v1059_v44, %v599_v50  ;;  %v706_v44 = vmul.f32 %v1065_v42, %v1788_v59  ;;  %v730_v50 = vmul.f32 %v1067_v46, %v1792_v61 }
 0x24c   : > { %v745_v59 = vmul.f32 %v1068_v54, %v1796_v63 }
 0x24d   : > { %v619_v24 = vadd.f32 %v617_v15, %v604_v37  ;;  %v605_v33 = vadd.f32 %v603_v19, %v590_v23  ;;  %v1070_v15 = vld [vmem:[#allocation5 + $0x11] ss:$0 sm:$0xff]  ;;  %v731_v37 = vmul.f32 %v1067_v46, %v1794_v62  ;;  %v1077_v46 = vld [vmem:[#allocation5 + $0x18] ss:$0 sm:$0xff] }
 0x24e   : > { %v614_v21 = vpop.permute.xlu1 %613  ;;  %v627_v22 = vpop.permute.xlu0 %626 }
 0x24f   : > { %v618_v28 = vmul.f32 %v1060_v6, %v614_v21  ;;  %v632_v29 = vmul.f32 %v1061_v16, %v627_v22  ;;  %v1071_v21 = vld [vmem:[#allocation5 + $0x12] ss:$0 sm:$0xff] }
 0x251   : > { %v634_v34 = vadd.f32 %v632_v29, %v619_v24  ;;  %v620_v40 = vadd.f32 %v618_v28, %v605_v33  ;;  %v1072_v24 = vld [vmem:[#allocation5 + $0x13] ss:$0 sm:$0xff]  ;;  %v761_v29 = vmul.f32 %v1069_v51, %v1802_v2 }
 0x252   : > { %v629_v18 = vpop.permute.xlu1 %628  ;;  %v770_v35 = vpop.permute.xlu0 %769 }
 0x253   : > { %v663_v25 = vadd.f32 %v661_v38, %v634_v34  ;;  %v633_v41 = vmul.f32 %v1061_v16, %v629_v18  ;;  %v775_v22 = vmul.f32 %v1070_v15, %v770_v35  ;;  %v1073_v34 = vld [vmem:[#allocation5 + $0x14] ss:$0 sm:$0xff] }
 0x255   : > { %v678_v5 = vadd.f32 %v676_v36, %v663_v25  ;;  %v635_v8 = vadd.f32 %v633_v41, %v620_v40  ;;  %v1075_v36 = vld [vmem:[#allocation5 + $0x16] ss:$0 sm:$0xff]  ;;  %v1074_v40 = vld [vmem:[#allocation5 + $0x15] ss:$0 sm:$0xff] }
 0x256   : > { %v772_v9 = vpop.permute.xlu1 %771  ;;  %v808_v10 = vpop.permute.xlu0 %807 }
 0x257   : > { %v693_v55 = vadd.f32 %v691_v43, %v678_v5  ;;  %v664_v45 = vadd.f32 %v662_v26, %v635_v8  ;;  %v813_v33 = vmul.f32 %v1071_v21, %v808_v10  ;;  %v776_v17 = vmul.f32 %v1070_v15, %v772_v9 }
 0x258   : > { %v867_v26 = vmul.f32 %v1075_v36, %v1700_v39 }
 0x259   : > { %v708_v14 = vadd.f32 %v706_v44, %v693_v55  ;;  %v679_v48 = vadd.f32 %v677_v13, %v664_v45  ;;  %v868_v45 = vmul.f32 %v1075_v36, %v1686_v3 }
 0x25a   : > { %v810_v6 = vpop.permute.xlu1 %809  ;;  %v823_v49 = vpop.permute.xlu0 %822 }
 0x25b   : > { %v694_v7 = vadd.f32 %v692_v47, %v679_v48  ;;  %v717_v56 = vadd.f32 %v715_v53, %v708_v14  ;;  %v828_v18 = vmul.f32 %v1072_v24, %v823_v49  ;;  %v814_v35 = vmul.f32 %v1071_v21, %v810_v6  ;;  %v1076_v53 = vld [vmem:[#allocation5 + $0x17] ss:$0 sm:$0xff]  ;;  %v1078_v6 = vld [vmem:[#allocation5 + $0x19] ss:$0 sm:$0xff] }
 0x25d   : > { %v709_v52 = vadd.f32 %v707_v31, %v694_v7  ;;  %v732_v4 = vadd.f32 %v730_v50, %v717_v56  ;;  %v1079_v7 = vld [vmem:[#allocation5 + $0x1a] ss:$0 sm:$0xff] }
 0x25e   : > { %v825_v58 = vpop.permute.xlu1 %824  ;;  %v838_v16 = vpop.permute.xlu0 %837 }
 0x25f   : > { %v747_v19 = vadd.f32 %v745_v59, %v732_v4  ;;  %v718_v20 = vadd.f32 %v716_v57, %v709_v52  ;;  %v843_v42 = vmul.f32 %v1073_v34, %v838_v16  ;;  %v829_v2 = vmul.f32 %v1072_v24, %v825_v58 }
 0x261   : > { %v762_v61 = vadd.f32 %v760_v32, %v747_v19  ;;  %v733_v23 = vadd.f32 %v731_v37, %v718_v20  ;;  %v1080_v32 = vld [vmem:[%s1887_s2] ss:$0 sm:$0xff] }
 0x262   : > { %v840_v28 = vpop.permute.xlu1 %839  ;;  %v853_v63 = vpop.permute.xlu0 %852 }
 0x263   : > { %v777_v30 = vadd.f32 %v775_v22, %v762_v61  ;;  %v748_v38 = vadd.f32 %v746_v60, %v733_v23  ;;  %v858_v8 = vmul.f32 %v1074_v40, %v853_v63  ;;  %v844_v44 = vmul.f32 %v1073_v34, %v840_v28 }
 0x265   : > { %v763_v62 = vadd.f32 %v761_v29, %v748_v38  ;;  %v815_v27 = vadd.f32 %v813_v33, %v777_v30 }
 0x266   : > { %v855_v25 = vpop.permute.xlu1 %854  ;;  %v877_v0 = vpop.permute.xlu0 %876 }
 0x267   : > { %v778_v41 = vadd.f32 %v776_v17, %v763_v62  ;;  %v830_v1 = vadd.f32 %v828_v18, %v815_v27  ;;  %v859_v14 = vmul.f32 %v1074_v40, %v855_v25  ;;  %v882_v54 = vmul.f32 %v1076_v53, %v877_v0 }
 0x269   : > { %v816_v43 = vadd.f32 %v814_v35, %v778_v41  ;;  %v845_v5 = vadd.f32 %v843_v42, %v830_v1 }
 0x26a   : > { %v879_v10 = vpop.permute.xlu1 %878  ;;  %v892_v13 = vpop.permute.xlu0 %891 }
 0x26b   : > { %v831_v9 = vadd.f32 %v829_v2, %v816_v43  ;;  %v860_v55 = vadd.f32 %v858_v8, %v845_v5  ;;  %v897_v50 = vmul.f32 %v1077_v46, %v892_v13  ;;  %v883_v51 = vmul.f32 %v1076_v53, %v879_v10 }
 0x26d   : > { %v846_v47 = vadd.f32 %v844_v44, %v831_v9  ;;  %v869_v48 = vadd.f32 %v867_v26, %v860_v55 }
 0x26e   : > { %v894_v57 = vpop.permute.xlu1 %893  ;;  %v907_v39 = vpop.permute.xlu0 %906 }
 0x26f   : > { %v861_v49 = vadd.f32 %v859_v14, %v846_v47  ;;  %v884_v31 = vadd.f32 %v882_v54, %v869_v48  ;;  %v912_v52 = vmul.f32 %v1078_v6, %v907_v39  ;;  %v898_v58 = vmul.f32 %v1077_v46, %v894_v57 }
 0x271   : > { %v870_v56 = vadd.f32 %v868_v45, %v861_v49  ;;  %v899_v59 = vadd.f32 %v897_v50, %v884_v31 }
 0x272   : > { %v909_v4 = vpop.permute.xlu1 %908  ;;  %v922_v3 = vpop.permute.xlu0 %921 }
 0x273   : > { %v885_v15 = vadd.f32 %v883_v51, %v870_v56  ;;  %v914_v16 = vadd.f32 %v912_v52, %v899_v59  ;;  %v927_v37 = vmul.f32 %v1079_v7, %v922_v3  ;;  %v913_v20 = vmul.f32 %v1078_v6, %v909_v4 }
 0x275   : > { %v900_v19 = vadd.f32 %v898_v58, %v885_v15  ;;  %v929_v21 = vadd.f32 %v927_v37, %v914_v16 }
 0x276   : > { %v924_v60 = vpop.permute.xlu1 %923 }
 0x277   : > { %v915_v61 = vadd.f32 %v913_v20, %v900_v19  ;;  %v938_v22 = vadd.f32 %v1080_v32, %v929_v21  ;;  %v928_v23 = vmul.f32 %v1079_v7, %v924_v60 }
 0x279   : > { %v940_v24 = vsel %vm1499_vm0, %v938_v22, 0.0  ;;  %v930_v28 = vadd.f32 %v928_v23, %v915_v61 }
 0x27a   : > { %942 = vst.msk [vmem:[%s203_s30] sm:$0xff] %vm452_vm10, %v940_v24 }
 0x27b   : > { %v939_v63 = vadd.f32 %v1080_v32, %v930_v28 }
 0x27d   : > { %v941_v29 = vsel %vm1504_vm1, %v939_v63, 0.0 }
 0x27e   : > { %943 = vst.msk [vmem:[%s203_s30 + $0x8] sm:$0xff] %vm452_vm10, %v941_v29 }
 0x27f   : > { %1232 = shalt.err (!%p1229_p7)
}
 0x280   : > { %s1233_s4 = scalar_lea.hbm %s1836_s18, 256  ;;  %s1237_s11 = scalar_lea.hbm %s1888_s3, 512 }
 0x281   : > { %p1234_p9 = scmp.ne.s32.totalorder %s1836_s18, %s1233_s4  ;;  %p1238_p5 = scmp.lt.u32.totalorder %s1836_s18, %s1888_s3 }
 0x282   : > { %p1239_p11 = scmp.lt.u32.totalorder %s1237_s11, %s1233_s4  ;;  %p1241_p4 = scmp.lt.u32.totalorder %s1233_s4, %s1836_s18 }
 0x283   : > { %p1235_p1 = pnand %p1234_p9, %p1422_p12 }
 0x284   : > { %p1240_p2 = por %p1239_p11, %p1238_p5 }
 0x285   : > { %p1236_p0 = pneg %p1235_p1 }
 0x286   : > { %p1242_p6 = por %p1241_p4, %p1240_p2 }
 0x288   : > { %p1243_p8 = pnand %p1242_p6, %p1236_p0 }
 0x28a   : > { %1246 = shalt.err (!%p1243_p8)
}
 0x28b   : > { %s1306_s23 = smov 128   ;;  %s1307_s29 = smov 8  }
 0x28c   : > { %1094 = dma.vmem_to_hbm [thread:$0]  (%p1422_p12), %s1838_s22, 256, %s1836_s18, %s945_s16, %s1306_s23, %s1306_s23, %s1307_s29  }
 0x28d PF: > { %s973_s30 = sand.u32 1, %s1277_s12   ;;  %p1907_p10 = scmp.ne.s32.totalorder %s1893_s19, 0 }
 0x28e   : > { %p1908_p13 = scmp.ge.s32.totalorder %s1289_s15, 2  ;;  %s974_s10 = scalar_lea.sflag [#allocation4], %s973_s30 }
 0x290   : > { %p1105_p3 = pnand %p1908_p13, %p1907_p10 }
 0x292   : > { %1272 = dma.done.wait (!%p1105_p3), %s974_s10, 256  }
 0x293   : > { %1274 = vsyncadd (!%p1105_p3), %s974_s10, 4294967040  ;;  %p17_p7 = scmp.ge.s32.totalorder %s1384_s24, 4   ;;  %s1909_s12 = smov %s1281_s13 }
 0x294   : > { %s1910_s13 = smov %s1285_s14  ;;  %s1911_s14 = smov %s1418_s17 }
 0x295   : > { %s1912_s15 = smov %s1384_s24  ;;  %19 = sbr.rel (!%p17_p7) target bundleno = 6 (0x6), region = 81 }
 0x29c   :  { %979 = vsyncpa [#allocation3], 1 }
 0x29d   :  { %981 = vsyncpa [#allocation3 + $0x1], 1 }
 0x29e   :  { %982 = vsyncpa [#allocation6], 1 }
 0x29f   :  { %983 = vsyncpa [#allocation4], 1 }
 0x2a0   :  { %985 = vsyncpa [#allocation4 + $0x1], 1 }

</bundles_post_ra>
